<compile_context>
chip_gen: v6e
topology: v6e:2x2x1
jax: 0.10.0
libtpu: 0.0.40
codegen_flags: <defaults>
</compile_context>

<pallas_src>
import math

import jax
import jax.numpy as jnp
from jax.experimental import pallas as pl
from jax.experimental.pallas import tpu as pltpu


def _round_up(x: int, m: int) -> int:
    return ((x + m - 1) // m) * m


# ----------------------------------------------------------------------------
# Fused multi-level VQ kernel.
#   x_ref   : (d, TILE_M)             flat input, channels on sublanes
#   e_ref   : (nv_max, d)  [SMEM]     active codebook (scalar reads)
#   q_ref   : (num_levels, d, TILE_M) quantized output for every level
#   sse_ref : (8, 128)                per-tile partial SSE; row 0, lane l holds
#                                     the SSE of level l for this tile.
# ----------------------------------------------------------------------------
def _make_vq_kernel(d, nv_max, num_levels, tile_m, m_valid, needs_mask):
    def kernel(x_ref, e_ref, q_ref, sse_ref):
        i = pl.program_id(0)
        x = x_ref[...]                                     # (d, tile_m) f32
        xs = [x[k:k + 1, :] for k in range(d)]             # d x (1, tile_m)

        if needs_mask:
            lane = jax.lax.broadcasted_iota(jnp.int32, (1, tile_m), 1)
            valid = (i * tile_m + lane) < m_valid          # (1, tile_m) bool
        else:
            valid = None

        # Exact squared distance to codeword j (direct form: also the SSE).
        def dist_to(j):
            diff = xs[0] - e_ref[j, 0]
            dd = diff * diff
            for k in range(1, d):
                diff = xs[k] - e_ref[j, k]
                dd = dd + diff * diff
            return dd                                      # (1, tile_m)

        # Prefix-min over codewords; strict '<' keeps the earliest index on
        # ties, matching torch.argmin.
        best_d = dist_to(0)
        best_c = [jnp.full((1, tile_m), e_ref[0, k], dtype=jnp.float32)
                  for k in range(d)]

        sse_levels = []
        next_j = 1
        for level in range(num_levels):
            nv = 2 ** (level + 1)
            for j in range(next_j, nv):
                dj = dist_to(j)
                better = dj < best_d
                best_d = jnp.where(better, dj, best_d)
                best_c = [jnp.where(better, e_ref[j, k], c)
                          for k, c in enumerate(best_c)]
            next_j = nv

            # Emit this level: nearest-codeword components + partial SSE.
            q_ref[level, :, :] = jnp.concatenate(best_c, axis=0)
            err = best_d if valid is None else jnp.where(valid, best_d, 0.0)
            sse_levels.append(jnp.sum(err))

        # Pack per-level partial SSEs into a full (8, 128) lane-dense block.
        row = jax.lax.broadcasted_iota(jnp.int32, (8, 128), 0)
        col = jax.lax.broadcasted_iota(jnp.int32, (8, 128), 1)
        blk = jnp.zeros((8, 128), jnp.float32)
        for l, s in enumerate(sse_levels):
            blk = blk + jnp.where((row == 0) & (col == l), s, 0.0)
        sse_ref[...] = blk

    return kernel


def _run_fused_vq(xt_pad, active_f32, num_levels, tile_m, m_valid):
    """xt_pad: (d, M_pad) f32, active_f32: (nv_max, d) f32."""
    d, m_pad = xt_pad.shape
    nv_max = active_f32.shape[0]
    num_tiles = m_pad // tile_m
    needs_mask = (m_pad != m_valid)

    kernel = _make_vq_kernel(d, nv_max, num_levels, tile_m, m_valid, needs_mask)

    q_all, sse_partials = pl.pallas_call(
        kernel,
        out_shape=(
            jax.ShapeDtypeStruct((num_levels, d, m_pad), jnp.float32),
            jax.ShapeDtypeStruct((num_tiles * 8, 128), jnp.float32),
        ),
        grid_spec=pltpu.PrefetchScalarGridSpec(
            num_scalar_prefetch=0,
            grid=(num_tiles,),
            in_specs=[
                pl.BlockSpec((d, tile_m), lambda i: (0, i)),
                pl.BlockSpec(memory_space=pltpu.MemorySpace.SMEM),
            ],
            out_specs=(
                pl.BlockSpec((num_levels, d, tile_m), lambda i: (0, 0, i)),
                pl.BlockSpec((8, 128), lambda i: (i, 0)),
            ),
        ),
        compiler_params=pltpu.CompilerParams(
            dimension_semantics=("parallel",),   # per-tile outputs -> megacore OK
        ),
    )(xt_pad, active_f32)

    sse = sse_partials.reshape(num_tiles, 8, 128)[:, 0, :num_levels].sum(axis=0)
    return q_all, sse


# ----------------------------------------------------------------------------
# Forward pass (training-mode forward values of the PyTorch module).
# ----------------------------------------------------------------------------
def adaptive_vq_forward(
    input_data: jax.Array,               # (N_users, B, C, H, W)
    num_active_vectors: int,             # power of 2
    previous_active_vectors: jax.Array,  # (>= num_active_vectors//2, d)
    codebook: jax.Array,                 # (p, d)
    commitment_loss_weight: float = 0.1,
    proximity_loss_weight: float = 0.33,
    training: bool = True,
    tile_m: int = 2048,
):
    N, B, C, H, W = input_data.shape
    d = C
    assert codebook.shape[1] == d
    nv_max = int(num_active_vectors)
    num_levels = int(math.log2(nv_max))
    assert 2 ** num_levels == nv_max and codebook.shape[0] >= nv_max

    NB = N * B
    M = NB * H * W

    # (N*B, C, H, W) -> (C, N*B, H, W) -> (d, M): channels on sublanes,
    # spatial/batch positions on lanes (lane-dense).
    xt = jnp.transpose(input_data.reshape(NB, C, H, W),
                       (1, 0, 2, 3)).reshape(d, M).astype(jnp.float32)

    tile = max(128, min(int(tile_m), _round_up(M, 128)))
    m_pad = _round_up(M, tile)
    if m_pad != M:
        xt = jnp.pad(xt, ((0, 0), (0, m_pad - M)))

    active = codebook[:nv_max]
    active_f32 = active.astype(jnp.float32)

    q_all, sse = _run_fused_vq(xt, active_f32, num_levels, tile, M)
    mse = sse / float(M * d)             # per-level mean squared quantization error

    # One reshape + one transpose for the whole slab:
    # (L, d, M) -> (L, C, NB, H, W) -> (L, NB, C, H, W)
    q_nbchw = jnp.transpose(
        q_all[:, :, :M].reshape(num_levels, C, NB, H, W), (0, 2, 1, 3, 4)
    ).astype(input_data.dtype)

    prev_f32 = previous_active_vectors.astype(jnp.float32)

    quantized_vectors, losses = [], []
    for level in range(num_levels):
        if training:
            quantization_loss = mse[level]
            alignment_loss = mse[level] if level in (0, 1) else 0.0
            proximity_loss = 0.0
            if level >= 1:
                kcut = 2 ** level    # == 2**(level+1) // 2
                proximity_loss = (
                    level * proximity_loss_weight
                    * jnp.mean((prev_f32[:kcut] - active_f32[:kcut]) ** 2)
                )
            loss_at_level = (quantization_loss
                             + commitment_loss_weight * alignment_loss
                             + proximity_loss)
        else:
            loss_at_level = 0.0
        # TODO(synk): straight-through estimator (.detach()) is gradient-only; forward value unchanged.
        quantized_vectors.append(q_nbchw[level])
        losses.append(loss_at_level)

    return quantized_vectors, losses, active


# ----------------------------------------------------------------------------
# Pure-JAX reference (sanity check only).
# ----------------------------------------------------------------------------
def _reference_forward(input_data, num_active_vectors, previous_active_vectors,
                       codebook, commitment_loss_weight=0.1,
                       proximity_loss_weight=0.33):
    N, B, C, H, W = input_data.shape
    flat = jnp.transpose(input_data.reshape(N * B, C, H, W),
                         (0, 2, 3, 1)).reshape(-1, C)
    quantized_vectors, losses = [], []
    active = None
    for level in range(int(math.log2(num_active_vectors))):
        nv = 2 ** (level + 1)
        active = codebook[:nv]
        dist = jnp.sum((flat[:, None, :] - active[None, :, :]) ** 2, axis=-1)
        idx = jnp.argmin(dist, axis=1)
        q_flat = active[idx]
        mse = jnp.mean((q_flat - flat) ** 2)
        align = mse if level in (0, 1) else 0.0
        prox = 0.0
        if level >= 1:
            k = nv // 2
            prox = (level * proximity_loss_weight
                    * jnp.mean((previous_active_vectors[:k] - active[:k]) ** 2))
        losses.append(mse + commitment_loss_weight * align + prox)
        quantized_vectors.append(
            jnp.transpose(q_flat.reshape(N * B, H, W, C), (0, 3, 1, 2)))
    return quantized_vectors, losses, codebook[:num_active_vectors]


if __name__ == "__main__":
    key = jax.random.PRNGKey(0)
    k_x1, k_x2, k_cb, k_prev = jax.random.split(key, 4)

    codebook_size, codebook_vector_dim = 16, 4
    codebook = jax.random.uniform(
        k_cb, (codebook_size, codebook_vector_dim),
        minval=-1.0 / codebook_size, maxval=1.0 / codebook_size,
        dtype=jnp.float32)
    previous_active_vectors = jax.random.uniform(
        k_prev, (codebook_size, codebook_vector_dim),
        minval=-1.0 / codebook_size, maxval=1.0 / codebook_size,
        dtype=jnp.float32)

    # Case 1: tile-aligned M (single tile, no masking), 3 levels.
    x1 = jax.random.normal(k_x1, (2, 2, 4, 16, 16), dtype=jnp.float32)
    # Case 2: ragged M with explicit small tile (multi-tile + mask path), 4 levels.
    x2 = jax.random.normal(k_x2, (2, 2, 4, 16, 12), dtype=jnp.float32)

    cases = [
        (x1, 8, 2048),
        (x2, 16, 512),
    ]

    for input_data, nav, tm in cases:
        qv, ls, act = adaptive_vq_forward(
            input_data, nav, previous_active_vectors, codebook, tile_m=tm)
        for q in qv:
            jax.block_until_ready(q)
        for l in ls:
            jax.block_until_ready(l)
        jax.block_until_ready(act)

        ref_q, ref_l, ref_act = _reference_forward(
            input_data, nav, previous_active_vectors, codebook)

        N, B, C, H, W = input_data.shape
        assert len(qv) == len(ref_q) == int(math.log2(nav))
        for q, rq in zip(qv, ref_q):
            assert q.shape == (N * B, C, H, W)
            assert jnp.allclose(q, rq, atol=1e-5, rtol=1e-5)
        for l, rl in zip(ls, ref_l):
            assert jnp.allclose(l, rl, atol=1e-5, rtol=1e-5)
        assert jnp.allclose(act, ref_act)

    print("KERNEL_OK")
</pallas_src>

<mosaic_0001>
module attributes {stable_mosaic.version = 11 : i64} {
  func.func @kernel(%arg0: i32, %arg1: memref<4x1024xf32, #tpu.memory_space<vmem>>, %arg2: memref<8x4xf32, #tpu.memory_space<smem>>, %arg3: memref<3x4x1024xf32, #tpu.memory_space<vmem>>, %arg4: memref<8x128xf32, #tpu.memory_space<vmem>>) attributes {dimension_semantics = [#tpu.dimension_semantics<parallel>], iteration_bounds = array<i64: 1>, scalar_prefetch = 0 : i64, scratch_operands = 0 : i64, tpu.core_type = #tpu.core_type<tc>, window_params = [{transform_indices = @transform_0, window_bounds = array<i64: 4, 1024>}, {transform_indices = @transform_1, window_bounds = array<i64: 8, 4>}, {transform_indices = @transform_2, window_bounds = array<i64: 3, 4, 1024>}, {transform_indices = @transform_3, window_bounds = array<i64: 8, 128>}]} {
    %c0 = arith.constant 0 : index
    %c0_0 = arith.constant 0 : index
    %0 = vector.load %arg1[%c0, %c0_0] : memref<4x1024xf32, #tpu.memory_space<vmem>>, vector<4x1024xf32>
    %1 = vector.extract_strided_slice %0 {offsets = [0, 0], sizes = [1, 1024], strides = [1, 1]} : vector<4x1024xf32> to vector<1x1024xf32>
    %2 = vector.extract_strided_slice %0 {offsets = [1, 0], sizes = [1, 1024], strides = [1, 1]} : vector<4x1024xf32> to vector<1x1024xf32>
    %3 = vector.extract_strided_slice %0 {offsets = [2, 0], sizes = [1, 1024], strides = [1, 1]} : vector<4x1024xf32> to vector<1x1024xf32>
    %4 = vector.extract_strided_slice %0 {offsets = [3, 0], sizes = [1, 1024], strides = [1, 1]} : vector<4x1024xf32> to vector<1x1024xf32>
    %c0_1 = arith.constant 0 : index
    %c0_2 = arith.constant 0 : index
    %5 = memref.load %arg2[%c0_1, %c0_2] : memref<8x4xf32, #tpu.memory_space<smem>>
    %6 = vector.broadcast %5 : f32 to vector<1x1024xf32>
    %7 = arith.subf %1, %6 : vector<1x1024xf32>
    %8 = arith.mulf %7, %7 : vector<1x1024xf32>
    %c0_3 = arith.constant 0 : index
    %c1 = arith.constant 1 : index
    %9 = memref.load %arg2[%c0_3, %c1] : memref<8x4xf32, #tpu.memory_space<smem>>
    %10 = vector.broadcast %9 : f32 to vector<1x1024xf32>
    %11 = arith.subf %2, %10 : vector<1x1024xf32>
    %12 = arith.mulf %11, %11 : vector<1x1024xf32>
    %13 = arith.addf %8, %12 : vector<1x1024xf32>
    %c0_4 = arith.constant 0 : index
    %c2 = arith.constant 2 : index
    %14 = memref.load %arg2[%c0_4, %c2] : memref<8x4xf32, #tpu.memory_space<smem>>
    %15 = vector.broadcast %14 : f32 to vector<1x1024xf32>
    %16 = arith.subf %3, %15 : vector<1x1024xf32>
    %17 = arith.mulf %16, %16 : vector<1x1024xf32>
    %18 = arith.addf %13, %17 : vector<1x1024xf32>
    %c0_5 = arith.constant 0 : index
    %c3 = arith.constant 3 : index
    %19 = memref.load %arg2[%c0_5, %c3] : memref<8x4xf32, #tpu.memory_space<smem>>
    %20 = vector.broadcast %19 : f32 to vector<1x1024xf32>
    %21 = arith.subf %4, %20 : vector<1x1024xf32>
    %22 = arith.mulf %21, %21 : vector<1x1024xf32>
    %23 = arith.addf %18, %22 : vector<1x1024xf32>
    %c0_6 = arith.constant 0 : index
    %c0_7 = arith.constant 0 : index
    %24 = memref.load %arg2[%c0_6, %c0_7] : memref<8x4xf32, #tpu.memory_space<smem>>
    %25 = vector.broadcast %24 : f32 to vector<1x1024xf32>
    %c0_8 = arith.constant 0 : index
    %c1_9 = arith.constant 1 : index
    %26 = memref.load %arg2[%c0_8, %c1_9] : memref<8x4xf32, #tpu.memory_space<smem>>
    %27 = vector.broadcast %26 : f32 to vector<1x1024xf32>
    %c0_10 = arith.constant 0 : index
    %c2_11 = arith.constant 2 : index
    %28 = memref.load %arg2[%c0_10, %c2_11] : memref<8x4xf32, #tpu.memory_space<smem>>
    %29 = vector.broadcast %28 : f32 to vector<1x1024xf32>
    %c0_12 = arith.constant 0 : index
    %c3_13 = arith.constant 3 : index
    %30 = memref.load %arg2[%c0_12, %c3_13] : memref<8x4xf32, #tpu.memory_space<smem>>
    %31 = vector.broadcast %30 : f32 to vector<1x1024xf32>
    %c1_14 = arith.constant 1 : index
    %c0_15 = arith.constant 0 : index
    %32 = memref.load %arg2[%c1_14, %c0_15] : memref<8x4xf32, #tpu.memory_space<smem>>
    %33 = vector.broadcast %32 : f32 to vector<1x1024xf32>
    %34 = arith.subf %1, %33 : vector<1x1024xf32>
    %35 = arith.mulf %34, %34 : vector<1x1024xf32>
    %c1_16 = arith.constant 1 : index
    %c1_17 = arith.constant 1 : index
    %36 = memref.load %arg2[%c1_16, %c1_17] : memref<8x4xf32, #tpu.memory_space<smem>>
    %37 = vector.broadcast %36 : f32 to vector<1x1024xf32>
    %38 = arith.subf %2, %37 : vector<1x1024xf32>
    %39 = arith.mulf %38, %38 : vector<1x1024xf32>
    %40 = arith.addf %35, %39 : vector<1x1024xf32>
    %c1_18 = arith.constant 1 : index
    %c2_19 = arith.constant 2 : index
    %41 = memref.load %arg2[%c1_18, %c2_19] : memref<8x4xf32, #tpu.memory_space<smem>>
    %42 = vector.broadcast %41 : f32 to vector<1x1024xf32>
    %43 = arith.subf %3, %42 : vector<1x1024xf32>
    %44 = arith.mulf %43, %43 : vector<1x1024xf32>
    %45 = arith.addf %40, %44 : vector<1x1024xf32>
    %c1_20 = arith.constant 1 : index
    %c3_21 = arith.constant 3 : index
    %46 = memref.load %arg2[%c1_20, %c3_21] : memref<8x4xf32, #tpu.memory_space<smem>>
    %47 = vector.broadcast %46 : f32 to vector<1x1024xf32>
    %48 = arith.subf %4, %47 : vector<1x1024xf32>
    %49 = arith.mulf %48, %48 : vector<1x1024xf32>
    %50 = arith.addf %45, %49 : vector<1x1024xf32>
    %51 = arith.cmpf olt, %50, %23 : vector<1x1024xf32>
    %52 = arith.select %51, %50, %23 : vector<1x1024xi1>, vector<1x1024xf32>
    %c1_22 = arith.constant 1 : index
    %c0_23 = arith.constant 0 : index
    %53 = memref.load %arg2[%c1_22, %c0_23] : memref<8x4xf32, #tpu.memory_space<smem>>
    %54 = vector.broadcast %53 : f32 to vector<1x1024xf32>
    %55 = arith.select %51, %54, %25 : vector<1x1024xi1>, vector<1x1024xf32>
    %c1_24 = arith.constant 1 : index
    %c1_25 = arith.constant 1 : index
    %56 = memref.load %arg2[%c1_24, %c1_25] : memref<8x4xf32, #tpu.memory_space<smem>>
    %57 = vector.broadcast %56 : f32 to vector<1x1024xf32>
    %58 = arith.select %51, %57, %27 : vector<1x1024xi1>, vector<1x1024xf32>
    %c1_26 = arith.constant 1 : index
    %c2_27 = arith.constant 2 : index
    %59 = memref.load %arg2[%c1_26, %c2_27] : memref<8x4xf32, #tpu.memory_space<smem>>
    %60 = vector.broadcast %59 : f32 to vector<1x1024xf32>
    %61 = arith.select %51, %60, %29 : vector<1x1024xi1>, vector<1x1024xf32>
    %c1_28 = arith.constant 1 : index
    %c3_29 = arith.constant 3 : index
    %62 = memref.load %arg2[%c1_28, %c3_29] : memref<8x4xf32, #tpu.memory_space<smem>>
    %63 = vector.broadcast %62 : f32 to vector<1x1024xf32>
    %64 = arith.select %51, %63, %31 : vector<1x1024xi1>, vector<1x1024xf32>
    %65 = tpu.concatenate %55, %58, %61, %64 in 0 : vector<1x1024xf32>, vector<1x1024xf32>, vector<1x1024xf32>, vector<1x1024xf32> -> vector<4x1024xf32>
    %c0_30 = arith.constant 0 : index
    %c0_31 = arith.constant 0 : index
    %c0_32 = arith.constant 0 : index
    %66 = vector.load %arg3[%c0_30, %c0_31, %c0_32] : memref<3x4x1024xf32, #tpu.memory_space<vmem>>, vector<1x4x1024xf32>
    %67 = vector.shape_cast %66 : vector<1x4x1024xf32> to vector<4x1024xf32>
    %68 = vector.shape_cast %65 : vector<4x1024xf32> to vector<1x4x1024xf32>
    tpu.vector_store %arg3[%c0_30, %c0_31, %c0_32], %68 {strides = array<i32>} : memref<3x4x1024xf32, #tpu.memory_space<vmem>>, vector<1x4x1024xf32>,
    %69 = vector.shape_cast %52 : vector<1x1024xf32> to vector<1x1x1024xf32>
    %cst = arith.constant dense<0.000000e+00> : vector<1xf32>
    %70 = vector.multi_reduction <add>, %69, %cst [1, 2] : vector<1x1x1024xf32> to vector<1xf32>
    %71 = vector.shape_cast %70 : vector<1xf32> to vector<1x1x1xf32>
    %72 = vector.extract %71[0, 0, 0] : f32 from vector<1x1x1xf32>
    %c2_33 = arith.constant 2 : index
    %c0_34 = arith.constant 0 : index
    %73 = memref.load %arg2[%c2_33, %c0_34] : memref<8x4xf32, #tpu.memory_space<smem>>
    %74 = vector.broadcast %73 : f32 to vector<1x1024xf32>
    %75 = arith.subf %1, %74 : vector<1x1024xf32>
    %76 = arith.mulf %75, %75 : vector<1x1024xf32>
    %c2_35 = arith.constant 2 : index
    %c1_36 = arith.constant 1 : index
    %77 = memref.load %arg2[%c2_35, %c1_36] : memref<8x4xf32, #tpu.memory_space<smem>>
    %78 = vector.broadcast %77 : f32 to vector<1x1024xf32>
    %79 = arith.subf %2, %78 : vector<1x1024xf32>
    %80 = arith.mulf %79, %79 : vector<1x1024xf32>
    %81 = arith.addf %76, %80 : vector<1x1024xf32>
    %c2_37 = arith.constant 2 : index
    %c2_38 = arith.constant 2 : index
    %82 = memref.load %arg2[%c2_37, %c2_38] : memref<8x4xf32, #tpu.memory_space<smem>>
    %83 = vector.broadcast %82 : f32 to vector<1x1024xf32>
    %84 = arith.subf %3, %83 : vector<1x1024xf32>
    %85 = arith.mulf %84, %84 : vector<1x1024xf32>
    %86 = arith.addf %81, %85 : vector<1x1024xf32>
    %c2_39 = arith.constant 2 : index
    %c3_40 = arith.constant 3 : index
    %87 = memref.load %arg2[%c2_39, %c3_40] : memref<8x4xf32, #tpu.memory_space<smem>>
    %88 = vector.broadcast %87 : f32 to vector<1x1024xf32>
    %89 = arith.subf %4, %88 : vector<1x1024xf32>
    %90 = arith.mulf %89, %89 : vector<1x1024xf32>
    %91 = arith.addf %86, %90 : vector<1x1024xf32>
    %92 = arith.cmpf olt, %91, %52 : vector<1x1024xf32>
    %93 = arith.select %92, %91, %52 : vector<1x1024xi1>, vector<1x1024xf32>
    %c2_41 = arith.constant 2 : index
    %c0_42 = arith.constant 0 : index
    %94 = memref.load %arg2[%c2_41, %c0_42] : memref<8x4xf32, #tpu.memory_space<smem>>
    %95 = vector.broadcast %94 : f32 to vector<1x1024xf32>
    %96 = arith.select %92, %95, %55 : vector<1x1024xi1>, vector<1x1024xf32>
    %c2_43 = arith.constant 2 : index
    %c1_44 = arith.constant 1 : index
    %97 = memref.load %arg2[%c2_43, %c1_44] : memref<8x4xf32, #tpu.memory_space<smem>>
    %98 = vector.broadcast %97 : f32 to vector<1x1024xf32>
    %99 = arith.select %92, %98, %58 : vector<1x1024xi1>, vector<1x1024xf32>
    %c2_45 = arith.constant 2 : index
    %c2_46 = arith.constant 2 : index
    %100 = memref.load %arg2[%c2_45, %c2_46] : memref<8x4xf32, #tpu.memory_space<smem>>
    %101 = vector.broadcast %100 : f32 to vector<1x1024xf32>
    %102 = arith.select %92, %101, %61 : vector<1x1024xi1>, vector<1x1024xf32>
    %c2_47 = arith.constant 2 : index
    %c3_48 = arith.constant 3 : index
    %103 = memref.load %arg2[%c2_47, %c3_48] : memref<8x4xf32, #tpu.memory_space<smem>>
    %104 = vector.broadcast %103 : f32 to vector<1x1024xf32>
    %105 = arith.select %92, %104, %64 : vector<1x1024xi1>, vector<1x1024xf32>
    %c3_49 = arith.constant 3 : index
    %c0_50 = arith.constant 0 : index
    %106 = memref.load %arg2[%c3_49, %c0_50] : memref<8x4xf32, #tpu.memory_space<smem>>
    %107 = vector.broadcast %106 : f32 to vector<1x1024xf32>
    %108 = arith.subf %1, %107 : vector<1x1024xf32>
    %109 = arith.mulf %108, %108 : vector<1x1024xf32>
    %c3_51 = arith.constant 3 : index
    %c1_52 = arith.constant 1 : index
    %110 = memref.load %arg2[%c3_51, %c1_52] : memref<8x4xf32, #tpu.memory_space<smem>>
    %111 = vector.broadcast %110 : f32 to vector<1x1024xf32>
    %112 = arith.subf %2, %111 : vector<1x1024xf32>
    %113 = arith.mulf %112, %112 : vector<1x1024xf32>
    %114 = arith.addf %109, %113 : vector<1x1024xf32>
    %c3_53 = arith.constant 3 : index
    %c2_54 = arith.constant 2 : index
    %115 = memref.load %arg2[%c3_53, %c2_54] : memref<8x4xf32, #tpu.memory_space<smem>>
    %116 = vector.broadcast %115 : f32 to vector<1x1024xf32>
    %117 = arith.subf %3, %116 : vector<1x1024xf32>
    %118 = arith.mulf %117, %117 : vector<1x1024xf32>
    %119 = arith.addf %114, %118 : vector<1x1024xf32>
    %c3_55 = arith.constant 3 : index
    %c3_56 = arith.constant 3 : index
    %120 = memref.load %arg2[%c3_55, %c3_56] : memref<8x4xf32, #tpu.memory_space<smem>>
    %121 = vector.broadcast %120 : f32 to vector<1x1024xf32>
    %122 = arith.subf %4, %121 : vector<1x1024xf32>
    %123 = arith.mulf %122, %122 : vector<1x1024xf32>
    %124 = arith.addf %119, %123 : vector<1x1024xf32>
    %125 = arith.cmpf olt, %124, %93 : vector<1x1024xf32>
    %126 = arith.select %125, %124, %93 : vector<1x1024xi1>, vector<1x1024xf32>
    %c3_57 = arith.constant 3 : index
    %c0_58 = arith.constant 0 : index
    %127 = memref.load %arg2[%c3_57, %c0_58] : memref<8x4xf32, #tpu.memory_space<smem>>
    %128 = vector.broadcast %127 : f32 to vector<1x1024xf32>
    %129 = arith.select %125, %128, %96 : vector<1x1024xi1>, vector<1x1024xf32>
    %c3_59 = arith.constant 3 : index
    %c1_60 = arith.constant 1 : index
    %130 = memref.load %arg2[%c3_59, %c1_60] : memref<8x4xf32, #tpu.memory_space<smem>>
    %131 = vector.broadcast %130 : f32 to vector<1x1024xf32>
    %132 = arith.select %125, %131, %99 : vector<1x1024xi1>, vector<1x1024xf32>
    %c3_61 = arith.constant 3 : index
    %c2_62 = arith.constant 2 : index
    %133 = memref.load %arg2[%c3_61, %c2_62] : memref<8x4xf32, #tpu.memory_space<smem>>
    %134 = vector.broadcast %133 : f32 to vector<1x1024xf32>
    %135 = arith.select %125, %134, %102 : vector<1x1024xi1>, vector<1x1024xf32>
    %c3_63 = arith.constant 3 : index
    %c3_64 = arith.constant 3 : index
    %136 = memref.load %arg2[%c3_63, %c3_64] : memref<8x4xf32, #tpu.memory_space<smem>>
    %137 = vector.broadcast %136 : f32 to vector<1x1024xf32>
    %138 = arith.select %125, %137, %105 : vector<1x1024xi1>, vector<1x1024xf32>
    %139 = tpu.concatenate %129, %132, %135, %138 in 0 : vector<1x1024xf32>, vector<1x1024xf32>, vector<1x1024xf32>, vector<1x1024xf32> -> vector<4x1024xf32>
    %c1_65 = arith.constant 1 : index
    %c0_66 = arith.constant 0 : index
    %c0_67 = arith.constant 0 : index
    %140 = vector.load %arg3[%c1_65, %c0_66, %c0_67] : memref<3x4x1024xf32, #tpu.memory_space<vmem>>, vector<1x4x1024xf32>
    %141 = vector.shape_cast %140 : vector<1x4x1024xf32> to vector<4x1024xf32>
    %142 = vector.shape_cast %139 : vector<4x1024xf32> to vector<1x4x1024xf32>
    tpu.vector_store %arg3[%c1_65, %c0_66, %c0_67], %142 {strides = array<i32>} : memref<3x4x1024xf32, #tpu.memory_space<vmem>>, vector<1x4x1024xf32>,
    %143 = vector.shape_cast %126 : vector<1x1024xf32> to vector<1x1x1024xf32>
    %cst_68 = arith.constant dense<0.000000e+00> : vector<1xf32>
    %144 = vector.multi_reduction <add>, %143, %cst_68 [1, 2] : vector<1x1x1024xf32> to vector<1xf32>
    %145 = vector.shape_cast %144 : vector<1xf32> to vector<1x1x1xf32>
    %146 = vector.extract %145[0, 0, 0] : f32 from vector<1x1x1xf32>
    %c4 = arith.constant 4 : index
    %c0_69 = arith.constant 0 : index
    %147 = memref.load %arg2[%c4, %c0_69] : memref<8x4xf32, #tpu.memory_space<smem>>
    %148 = vector.broadcast %147 : f32 to vector<1x1024xf32>
    %149 = arith.subf %1, %148 : vector<1x1024xf32>
    %150 = arith.mulf %149, %149 : vector<1x1024xf32>
    %c4_70 = arith.constant 4 : index
    %c1_71 = arith.constant 1 : index
    %151 = memref.load %arg2[%c4_70, %c1_71] : memref<8x4xf32, #tpu.memory_space<smem>>
    %152 = vector.broadcast %151 : f32 to vector<1x1024xf32>
    %153 = arith.subf %2, %152 : vector<1x1024xf32>
    %154 = arith.mulf %153, %153 : vector<1x1024xf32>
    %155 = arith.addf %150, %154 : vector<1x1024xf32>
    %c4_72 = arith.constant 4 : index
    %c2_73 = arith.constant 2 : index
    %156 = memref.load %arg2[%c4_72, %c2_73] : memref<8x4xf32, #tpu.memory_space<smem>>
    %157 = vector.broadcast %156 : f32 to vector<1x1024xf32>
    %158 = arith.subf %3, %157 : vector<1x1024xf32>
    %159 = arith.mulf %158, %158 : vector<1x1024xf32>
    %160 = arith.addf %155, %159 : vector<1x1024xf32>
    %c4_74 = arith.constant 4 : index
    %c3_75 = arith.constant 3 : index
    %161 = memref.load %arg2[%c4_74, %c3_75] : memref<8x4xf32, #tpu.memory_space<smem>>
    %162 = vector.broadcast %161 : f32 to vector<1x1024xf32>
    %163 = arith.subf %4, %162 : vector<1x1024xf32>
    %164 = arith.mulf %163, %163 : vector<1x1024xf32>
    %165 = arith.addf %160, %164 : vector<1x1024xf32>
    %166 = arith.cmpf olt, %165, %126 : vector<1x1024xf32>
    %167 = arith.select %166, %165, %126 : vector<1x1024xi1>, vector<1x1024xf32>
    %c4_76 = arith.constant 4 : index
    %c0_77 = arith.constant 0 : index
    %168 = memref.load %arg2[%c4_76, %c0_77] : memref<8x4xf32, #tpu.memory_space<smem>>
    %169 = vector.broadcast %168 : f32 to vector<1x1024xf32>
    %170 = arith.select %166, %169, %129 : vector<1x1024xi1>, vector<1x1024xf32>
    %c4_78 = arith.constant 4 : index
    %c1_79 = arith.constant 1 : index
    %171 = memref.load %arg2[%c4_78, %c1_79] : memref<8x4xf32, #tpu.memory_space<smem>>
    %172 = vector.broadcast %171 : f32 to vector<1x1024xf32>
    %173 = arith.select %166, %172, %132 : vector<1x1024xi1>, vector<1x1024xf32>
    %c4_80 = arith.constant 4 : index
    %c2_81 = arith.constant 2 : index
    %174 = memref.load %arg2[%c4_80, %c2_81] : memref<8x4xf32, #tpu.memory_space<smem>>
    %175 = vector.broadcast %174 : f32 to vector<1x1024xf32>
    %176 = arith.select %166, %175, %135 : vector<1x1024xi1>, vector<1x1024xf32>
    %c4_82 = arith.constant 4 : index
    %c3_83 = arith.constant 3 : index
    %177 = memref.load %arg2[%c4_82, %c3_83] : memref<8x4xf32, #tpu.memory_space<smem>>
    %178 = vector.broadcast %177 : f32 to vector<1x1024xf32>
    %179 = arith.select %166, %178, %138 : vector<1x1024xi1>, vector<1x1024xf32>
    %c5 = arith.constant 5 : index
    %c0_84 = arith.constant 0 : index
    %180 = memref.load %arg2[%c5, %c0_84] : memref<8x4xf32, #tpu.memory_space<smem>>
    %181 = vector.broadcast %180 : f32 to vector<1x1024xf32>
    %182 = arith.subf %1, %181 : vector<1x1024xf32>
    %183 = arith.mulf %182, %182 : vector<1x1024xf32>
    %c5_85 = arith.constant 5 : index
    %c1_86 = arith.constant 1 : index
    %184 = memref.load %arg2[%c5_85, %c1_86] : memref<8x4xf32, #tpu.memory_space<smem>>
    %185 = vector.broadcast %184 : f32 to vector<1x1024xf32>
    %186 = arith.subf %2, %185 : vector<1x1024xf32>
    %187 = arith.mulf %186, %186 : vector<1x1024xf32>
    %188 = arith.addf %183, %187 : vector<1x1024xf32>
    %c5_87 = arith.constant 5 : index
    %c2_88 = arith.constant 2 : index
    %189 = memref.load %arg2[%c5_87, %c2_88] : memref<8x4xf32, #tpu.memory_space<smem>>
    %190 = vector.broadcast %189 : f32 to vector<1x1024xf32>
    %191 = arith.subf %3, %190 : vector<1x1024xf32>
    %192 = arith.mulf %191, %191 : vector<1x1024xf32>
    %193 = arith.addf %188, %192 : vector<1x1024xf32>
    %c5_89 = arith.constant 5 : index
    %c3_90 = arith.constant 3 : index
    %194 = memref.load %arg2[%c5_89, %c3_90] : memref<8x4xf32, #tpu.memory_space<smem>>
    %195 = vector.broadcast %194 : f32 to vector<1x1024xf32>
    %196 = arith.subf %4, %195 : vector<1x1024xf32>
    %197 = arith.mulf %196, %196 : vector<1x1024xf32>
    %198 = arith.addf %193, %197 : vector<1x1024xf32>
    %199 = arith.cmpf olt, %198, %167 : vector<1x1024xf32>
    %200 = arith.select %199, %198, %167 : vector<1x1024xi1>, vector<1x1024xf32>
    %c5_91 = arith.constant 5 : index
    %c0_92 = arith.constant 0 : index
    %201 = memref.load %arg2[%c5_91, %c0_92] : memref<8x4xf32, #tpu.memory_space<smem>>
    %202 = vector.broadcast %201 : f32 to vector<1x1024xf32>
    %203 = arith.select %199, %202, %170 : vector<1x1024xi1>, vector<1x1024xf32>
    %c5_93 = arith.constant 5 : index
    %c1_94 = arith.constant 1 : index
    %204 = memref.load %arg2[%c5_93, %c1_94] : memref<8x4xf32, #tpu.memory_space<smem>>
    %205 = vector.broadcast %204 : f32 to vector<1x1024xf32>
    %206 = arith.select %199, %205, %173 : vector<1x1024xi1>, vector<1x1024xf32>
    %c5_95 = arith.constant 5 : index
    %c2_96 = arith.constant 2 : index
    %207 = memref.load %arg2[%c5_95, %c2_96] : memref<8x4xf32, #tpu.memory_space<smem>>
    %208 = vector.broadcast %207 : f32 to vector<1x1024xf32>
    %209 = arith.select %199, %208, %176 : vector<1x1024xi1>, vector<1x1024xf32>
    %c5_97 = arith.constant 5 : index
    %c3_98 = arith.constant 3 : index
    %210 = memref.load %arg2[%c5_97, %c3_98] : memref<8x4xf32, #tpu.memory_space<smem>>
    %211 = vector.broadcast %210 : f32 to vector<1x1024xf32>
    %212 = arith.select %199, %211, %179 : vector<1x1024xi1>, vector<1x1024xf32>
    %c6 = arith.constant 6 : index
    %c0_99 = arith.constant 0 : index
    %213 = memref.load %arg2[%c6, %c0_99] : memref<8x4xf32, #tpu.memory_space<smem>>
    %214 = vector.broadcast %213 : f32 to vector<1x1024xf32>
    %215 = arith.subf %1, %214 : vector<1x1024xf32>
    %216 = arith.mulf %215, %215 : vector<1x1024xf32>
    %c6_100 = arith.constant 6 : index
    %c1_101 = arith.constant 1 : index
    %217 = memref.load %arg2[%c6_100, %c1_101] : memref<8x4xf32, #tpu.memory_space<smem>>
    %218 = vector.broadcast %217 : f32 to vector<1x1024xf32>
    %219 = arith.subf %2, %218 : vector<1x1024xf32>
    %220 = arith.mulf %219, %219 : vector<1x1024xf32>
    %221 = arith.addf %216, %220 : vector<1x1024xf32>
    %c6_102 = arith.constant 6 : index
    %c2_103 = arith.constant 2 : index
    %222 = memref.load %arg2[%c6_102, %c2_103] : memref<8x4xf32, #tpu.memory_space<smem>>
    %223 = vector.broadcast %222 : f32 to vector<1x1024xf32>
    %224 = arith.subf %3, %223 : vector<1x1024xf32>
    %225 = arith.mulf %224, %224 : vector<1x1024xf32>
    %226 = arith.addf %221, %225 : vector<1x1024xf32>
    %c6_104 = arith.constant 6 : index
    %c3_105 = arith.constant 3 : index
    %227 = memref.load %arg2[%c6_104, %c3_105] : memref<8x4xf32, #tpu.memory_space<smem>>
    %228 = vector.broadcast %227 : f32 to vector<1x1024xf32>
    %229 = arith.subf %4, %228 : vector<1x1024xf32>
    %230 = arith.mulf %229, %229 : vector<1x1024xf32>
    %231 = arith.addf %226, %230 : vector<1x1024xf32>
    %232 = arith.cmpf olt, %231, %200 : vector<1x1024xf32>
    %233 = arith.select %232, %231, %200 : vector<1x1024xi1>, vector<1x1024xf32>
    %c6_106 = arith.constant 6 : index
    %c0_107 = arith.constant 0 : index
    %234 = memref.load %arg2[%c6_106, %c0_107] : memref<8x4xf32, #tpu.memory_space<smem>>
    %235 = vector.broadcast %234 : f32 to vector<1x1024xf32>
    %236 = arith.select %232, %235, %203 : vector<1x1024xi1>, vector<1x1024xf32>
    %c6_108 = arith.constant 6 : index
    %c1_109 = arith.constant 1 : index
    %237 = memref.load %arg2[%c6_108, %c1_109] : memref<8x4xf32, #tpu.memory_space<smem>>
    %238 = vector.broadcast %237 : f32 to vector<1x1024xf32>
    %239 = arith.select %232, %238, %206 : vector<1x1024xi1>, vector<1x1024xf32>
    %c6_110 = arith.constant 6 : index
    %c2_111 = arith.constant 2 : index
    %240 = memref.load %arg2[%c6_110, %c2_111] : memref<8x4xf32, #tpu.memory_space<smem>>
    %241 = vector.broadcast %240 : f32 to vector<1x1024xf32>
    %242 = arith.select %232, %241, %209 : vector<1x1024xi1>, vector<1x1024xf32>
    %c6_112 = arith.constant 6 : index
    %c3_113 = arith.constant 3 : index
    %243 = memref.load %arg2[%c6_112, %c3_113] : memref<8x4xf32, #tpu.memory_space<smem>>
    %244 = vector.broadcast %243 : f32 to vector<1x1024xf32>
    %245 = arith.select %232, %244, %212 : vector<1x1024xi1>, vector<1x1024xf32>
    %c7 = arith.constant 7 : index
    %c0_114 = arith.constant 0 : index
    %246 = memref.load %arg2[%c7, %c0_114] : memref<8x4xf32, #tpu.memory_space<smem>>
    %247 = vector.broadcast %246 : f32 to vector<1x1024xf32>
    %248 = arith.subf %1, %247 : vector<1x1024xf32>
    %249 = arith.mulf %248, %248 : vector<1x1024xf32>
    %c7_115 = arith.constant 7 : index
    %c1_116 = arith.constant 1 : index
    %250 = memref.load %arg2[%c7_115, %c1_116] : memref<8x4xf32, #tpu.memory_space<smem>>
    %251 = vector.broadcast %250 : f32 to vector<1x1024xf32>
    %252 = arith.subf %2, %251 : vector<1x1024xf32>
    %253 = arith.mulf %252, %252 : vector<1x1024xf32>
    %254 = arith.addf %249, %253 : vector<1x1024xf32>
    %c7_117 = arith.constant 7 : index
    %c2_118 = arith.constant 2 : index
    %255 = memref.load %arg2[%c7_117, %c2_118] : memref<8x4xf32, #tpu.memory_space<smem>>
    %256 = vector.broadcast %255 : f32 to vector<1x1024xf32>
    %257 = arith.subf %3, %256 : vector<1x1024xf32>
    %258 = arith.mulf %257, %257 : vector<1x1024xf32>
    %259 = arith.addf %254, %258 : vector<1x1024xf32>
    %c7_119 = arith.constant 7 : index
    %c3_120 = arith.constant 3 : index
    %260 = memref.load %arg2[%c7_119, %c3_120] : memref<8x4xf32, #tpu.memory_space<smem>>
    %261 = vector.broadcast %260 : f32 to vector<1x1024xf32>
    %262 = arith.subf %4, %261 : vector<1x1024xf32>
    %263 = arith.mulf %262, %262 : vector<1x1024xf32>
    %264 = arith.addf %259, %263 : vector<1x1024xf32>
    %265 = arith.cmpf olt, %264, %233 : vector<1x1024xf32>
    %266 = arith.select %265, %264, %233 : vector<1x1024xi1>, vector<1x1024xf32>
    %c7_121 = arith.constant 7 : index
    %c0_122 = arith.constant 0 : index
    %267 = memref.load %arg2[%c7_121, %c0_122] : memref<8x4xf32, #tpu.memory_space<smem>>
    %268 = vector.broadcast %267 : f32 to vector<1x1024xf32>
    %269 = arith.select %265, %268, %236 : vector<1x1024xi1>, vector<1x1024xf32>
    %c7_123 = arith.constant 7 : index
    %c1_124 = arith.constant 1 : index
    %270 = memref.load %arg2[%c7_123, %c1_124] : memref<8x4xf32, #tpu.memory_space<smem>>
    %271 = vector.broadcast %270 : f32 to vector<1x1024xf32>
    %272 = arith.select %265, %271, %239 : vector<1x1024xi1>, vector<1x1024xf32>
    %c7_125 = arith.constant 7 : index
    %c2_126 = arith.constant 2 : index
    %273 = memref.load %arg2[%c7_125, %c2_126] : memref<8x4xf32, #tpu.memory_space<smem>>
    %274 = vector.broadcast %273 : f32 to vector<1x1024xf32>
    %275 = arith.select %265, %274, %242 : vector<1x1024xi1>, vector<1x1024xf32>
    %c7_127 = arith.constant 7 : index
    %c3_128 = arith.constant 3 : index
    %276 = memref.load %arg2[%c7_127, %c3_128] : memref<8x4xf32, #tpu.memory_space<smem>>
    %277 = vector.broadcast %276 : f32 to vector<1x1024xf32>
    %278 = arith.select %265, %277, %245 : vector<1x1024xi1>, vector<1x1024xf32>
    %279 = tpu.concatenate %269, %272, %275, %278 in 0 : vector<1x1024xf32>, vector<1x1024xf32>, vector<1x1024xf32>, vector<1x1024xf32> -> vector<4x1024xf32>
    %c2_129 = arith.constant 2 : index
    %c0_130 = arith.constant 0 : index
    %c0_131 = arith.constant 0 : index
    %280 = vector.load %arg3[%c2_129, %c0_130, %c0_131] : memref<3x4x1024xf32, #tpu.memory_space<vmem>>, vector<1x4x1024xf32>
    %281 = vector.shape_cast %280 : vector<1x4x1024xf32> to vector<4x1024xf32>
    %282 = vector.shape_cast %279 : vector<4x1024xf32> to vector<1x4x1024xf32>
    tpu.vector_store %arg3[%c2_129, %c0_130, %c0_131], %282 {strides = array<i32>} : memref<3x4x1024xf32, #tpu.memory_space<vmem>>, vector<1x4x1024xf32>,
    %283 = vector.shape_cast %266 : vector<1x1024xf32> to vector<1x1x1024xf32>
    %cst_132 = arith.constant dense<0.000000e+00> : vector<1xf32>
    %284 = vector.multi_reduction <add>, %283, %cst_132 [1, 2] : vector<1x1x1024xf32> to vector<1xf32>
    %285 = vector.shape_cast %284 : vector<1xf32> to vector<1x1x1xf32>
    %286 = vector.extract %285[0, 0, 0] : f32 from vector<1x1x1xf32>
    %287 = tpu.iota {dimensions = array<i32: 0>} : vector<8x128xi32>
    %288 = tpu.iota {dimensions = array<i32: 1>} : vector<8x128xi32>
    %cst_133 = arith.constant 0.000000e+00 : f32
    %289 = vector.broadcast %cst_133 : f32 to vector<8x128xf32>
    %c0_i32 = arith.constant 0 : i32
    %290 = vector.broadcast %c0_i32 : i32 to vector<8x128xi32>
    %291 = arith.cmpi eq, %287, %290 : vector<8x128xi32>
    %c0_i32_134 = arith.constant 0 : i32
    %292 = vector.broadcast %c0_i32_134 : i32 to vector<8x128xi32>
    %293 = arith.cmpi eq, %288, %292 : vector<8x128xi32>
    %294 = arith.andi %291, %293 : vector<8x128xi1>
    %cst_135 = arith.constant 0.000000e+00 : f32
    %295 = vector.broadcast %72 : f32 to vector<8x128xf32>
    %296 = vector.broadcast %cst_135 : f32 to vector<8x128xf32>
    %297 = arith.select %294, %295, %296 : vector<8x128xi1>, vector<8x128xf32>
    %298 = arith.addf %289, %297 : vector<8x128xf32>
    %c0_i32_136 = arith.constant 0 : i32
    %299 = vector.broadcast %c0_i32_136 : i32 to vector<8x128xi32>
    %300 = arith.cmpi eq, %287, %299 : vector<8x128xi32>
    %c1_i32 = arith.constant 1 : i32
    %301 = vector.broadcast %c1_i32 : i32 to vector<8x128xi32>
    %302 = arith.cmpi eq, %288, %301 : vector<8x128xi32>
    %303 = arith.andi %300, %302 : vector<8x128xi1>
    %cst_137 = arith.constant 0.000000e+00 : f32
    %304 = vector.broadcast %146 : f32 to vector<8x128xf32>
    %305 = vector.broadcast %cst_137 : f32 to vector<8x128xf32>
    %306 = arith.select %303, %304, %305 : vector<8x128xi1>, vector<8x128xf32>
    %307 = arith.addf %298, %306 : vector<8x128xf32>
    %c0_i32_138 = arith.constant 0 : i32
    %308 = vector.broadcast %c0_i32_138 : i32 to vector<8x128xi32>
    %309 = arith.cmpi eq, %287, %308 : vector<8x128xi32>
    %c2_i32 = arith.constant 2 : i32
    %310 = vector.broadcast %c2_i32 : i32 to vector<8x128xi32>
    %311 = arith.cmpi eq, %288, %310 : vector<8x128xi32>
    %312 = arith.andi %309, %311 : vector<8x128xi1>
    %cst_139 = arith.constant 0.000000e+00 : f32
    %313 = vector.broadcast %286 : f32 to vector<8x128xf32>
    %314 = vector.broadcast %cst_139 : f32 to vector<8x128xf32>
    %315 = arith.select %312, %313, %314 : vector<8x128xi1>, vector<8x128xf32>
    %316 = arith.addf %307, %315 : vector<8x128xf32>
    %c0_140 = arith.constant 0 : index
    %c0_141 = arith.constant 0 : index
    %317 = vector.load %arg4[%c0_140, %c0_141] : memref<8x128xf32, #tpu.memory_space<vmem>>, vector<8x128xf32>
    tpu.vector_store %arg4[%c0_140, %c0_141], %316 {strides = array<i32>} : memref<8x128xf32, #tpu.memory_space<vmem>>, vector<8x128xf32>,
    return
  }
  func.func @transform_0(%arg0: i32) -> (i32, i32) {
    %c0_i32 = arith.constant 0 : i32
    %c0_i32_0 = arith.constant 0 : i32
    return %c0_i32, %arg0 : i32, i32
  }
  func.func @transform_1(%arg0: i32) -> (i32, i32) {
    %c0_i32 = arith.constant 0 : i32
    %c0_i32_0 = arith.constant 0 : i32
    %c0_i32_1 = arith.constant 0 : i32
    return %c0_i32, %c0_i32_0 : i32, i32
  }
  func.func @transform_2(%arg0: i32) -> (i32, i32, i32) {
    %c0_i32 = arith.constant 0 : i32
    %c0_i32_0 = arith.constant 0 : i32
    %c0_i32_1 = arith.constant 0 : i32
    return %c0_i32, %c0_i32_0, %arg0 : i32, i32, i32
  }
  func.func @transform_3(%arg0: i32) -> (i32, i32) {
    %c0_i32 = arith.constant 0 : i32
    %c0_i32_0 = arith.constant 0 : i32
    return %arg0, %c0_i32 : i32, i32
  }
}

</mosaic_0001>

<bundles_post_ra>
// kernel: tpu_custom_call.1
= control target key start
LH: loop header
LB: loop body
LE: loop exit
PB: predicated region body
PF: predicated region fallthrough
CT: control target
= control target key end

     0   :  { %9 = vsyncpa [#allocation3], 0  ;;  %s3656_s0 = inlined_call_operand.hbm [shape: f32[4,1024], index: 0, kind: input, shape index: {}]   ;;  %s3657_s1 = inlined_call_operand.vmem [shape: f32[8,4], index: 1, kind: input, shape index: {}]   ;;  %s3658_s2 = inlined_call_operand.hbm [shape: f32[3,4,1024], index: 2, kind: output, shape index: {0}]   ;;  %s3659_s3 = inlined_call_operand.hbm [shape: f32[8,128], index: 3, kind: output, shape index: {1}]  }
   0x1   :  { %10 = vsyncpa [#allocation5], 0 }
   0x2   :  { %11 = vsyncpa [#allocation4], 0 }
   0x3   :  { %12 = vsyncpa [#allocation9], 0  ;;  %s29_s14 = sshll.u32 %s3657_s1, 4  ;;  %s2157_s15 = smov [#allocation2]   ;;  %s30_s14 = int_to_ptr.vmem [resolvable:$true] %s29_s14 }
   0x4   :  { %s19_s16 = sshll.u32 %s2157_s15, 4  ;;  %s20_s16 = int_to_ptr.vmem [resolvable:$true] %s19_s16 }
   0x5   :  { %s2085_s17 = scalar_lea.vmem %s20_s16, 512  ;;  %p2090_p1 = scmp.lt.s32.totalorder %s20_s16, %s20_s16 }
   0x6   :  { %p2086_p0 = scmp.ne.s32.totalorder %s20_s16, %s2085_s17  ;;  %p2091_p2 = scmp.lt.s32.totalorder %s2085_s17, %s2085_s17 }
   0x8   :  { %p2092_p3 = por %p2091_p2, %p2090_p1 }
   0xa   :  { %p2093_p4 = pnand %p2092_p3, %p2086_p0 }
   0xc   :  { %2096 = shalt.err (!%p2093_p4)
}
   0xd   :  { %22 = dma.hbm_to_vmem [thread:$0]  %s3656_s0, 512, %s20_s16, [#allocation3]  }
   0xe   :  { %s2097_s20 = scalar_lea.vmem %s30_s14, 128  ;;  %p2102_p6 = scmp.lt.s32.totalorder %s30_s14, %s30_s14 }
   0xf   :  { %p2098_p5 = scmp.ne.s32.totalorder %s30_s14, %s2097_s20  ;;  %p2103_p7 = scmp.lt.s32.totalorder %s2097_s20, %s2097_s20 }
  0x11   :  { %p2104_p8 = por %p2103_p7, %p2102_p6 }
  0x13   :  { %p2105_p9 = pnand %p2104_p8, %p2098_p5 }
  0x15   :  { %2108 = shalt.err (!%p2105_p9)
}
  0x16   :  { %s2158_s1 = smov [#allocation6]  }
  0x17   :  { %32 = dma.vmem_to_smem %s30_s14, 128, %s2158_s1, [#allocation5]  }
  0x18   :  { %2149 = dma.done.wait [#allocation3], 512  }
  0x19   :  { %2150 = vsyncadd [#allocation3], 4294966784 }
  0x1a   :  { %2151 = dma.done.wait [#allocation5], 128  }
  0x1b   :  { %2152 = vsyncadd [#allocation5], 4294967168 }
  0x1c   :  { %39 = sfence }
  0x1d   :  { %s44_s21 = sld [smem:[#allocation6]]  ;;  %v3660_v0 = vlaneseq  ;;  %v2192_v2 = vld [vmem:[#allocation2] sm:$0xff]  ;;  %v2194_v3 = vld [vmem:[#allocation2 + $0x8] sm:$0xff]  ;;  %v2196_v4 = vld [vmem:[#allocation2 + $0x10] sm:$0xff]  ;;  %vm3684_vm0 = vcmask 1040384  }
  0x1e   :  { %s1934_s22 = sld [smem:[#allocation6 + $0x1]]  ;;  %v2198_v5 = vld [vmem:[#allocation2 + $0x18] sm:$0xff] }
  0x1f   :  { %s1939_s23 = sld [smem:[#allocation6 + $0x2]]  ;;  %v2190_v1 = vshrl.u32 %v3660_v0, 7 }
  0x20   :  { %s2202_s0 = sld [smem:[#allocation6 + $0x3]] }
  0x21   :  { %3783 = vst [vmem:[#allocation14_spill] sm:$0xff] %v2190_v1  ;;  %s2212_s24 = sld [smem:[#allocation6 + $0x80]]  ;;  %v2221_v13 = vsub.s32 0, %v2190_v1  ;;  %v2224_v14 = vsub.s32 4, %v2190_v1 }
  0x22   :  { %s2218_s25 = sld [smem:[#allocation6 + $0x81]] }
  0x23   :  { %v2200_v6 = vstv %s44_s21  ;;  %s2226_s26 = sld [smem:[#allocation6 + $0x82]] }
  0x24   :  { %v46_v7 = vsub.f32 %v2192_v2, %v2200_v6  ;;  %v47_v8 = vsub.f32 %v2194_v3, %v2200_v6  ;;  %v48_v9 = vsub.f32 %v2196_v4, %v2200_v6  ;;  %v49_v10 = vsub.f32 %v2198_v5, %v2200_v6  ;;  %s2272_s27 = sld [smem:[#allocation6 + $0x83]] }
  0x25   :  { %v2214_v11 = vstv %s1934_s22  ;;  %v2216_v12 = vstv %s1939_s23  ;;  %s2274_s28 = sld [smem:[#allocation6 + $0x100]] }
  0x26   :  { %v50_v15 = vmul.f32 %v46_v7, %v46_v7  ;;  %v51_v16 = vmul.f32 %v47_v8, %v47_v8  ;;  %v52_v17 = vmul.f32 %v48_v9, %v48_v9  ;;  %v53_v18 = vmul.f32 %v49_v10, %v49_v10  ;;  %s2276_s29 = sld [smem:[#allocation6 + $0x101]] }
  0x27   :  { %v56_v19 = vsub.f32 %v2192_v2, %v2214_v11  ;;  %v57_v20 = vsub.f32 %v2194_v3, %v2214_v11  ;;  %v58_v21 = vsub.f32 %v2196_v4, %v2214_v11  ;;  %v59_v22 = vsub.f32 %v2198_v5, %v2214_v11  ;;  %s2286_s30 = sld [smem:[#allocation6 + $0x102]] }
  0x28   :  { %v86_v23 = vsub.f32 %v2192_v2, %v2216_v12  ;;  %v87_v24 = vsub.f32 %v2194_v3, %v2216_v12  ;;  %v88_v25 = vsub.f32 %v2196_v4, %v2216_v12  ;;  %v89_v26 = vsub.f32 %v2198_v5, %v2216_v12  ;;  %s2380_s4 = sld [smem:[#allocation6 + $0x103]] }
  0x29   :  { %v60_v27 = vmul.f32 %v56_v19, %v56_v19  ;;  %v61_v28 = vmul.f32 %v57_v20, %v57_v20  ;;  %v62_v29 = vmul.f32 %v58_v21, %v58_v21  ;;  %v63_v30 = vmul.f32 %v59_v22, %v59_v22  ;;  %s2390_s5 = sld [smem:[#allocation6 + $0x180]] }
  0x2a   :  { %v90_v31 = vmul.f32 %v86_v23, %v86_v23  ;;  %v91_v32 = vmul.f32 %v87_v24, %v87_v24  ;;  %v92_v33 = vmul.f32 %v88_v25, %v88_v25  ;;  %v93_v34 = vmul.f32 %v89_v26, %v89_v26  ;;  %s2428_s6 = sld [smem:[#allocation6 + $0x181]] }
  0x2b   :  { %v1935_v35 = vrot.slane %v60_v27, 9  ;;  %v1936_v36 = vrot.slane %v61_v28, 9  ;;  %v1937_v37 = vrot.slane %v62_v29, 9  ;;  %v1938_v38 = vrot.slane %v63_v30, 9  ;;  %s2432_s7 = sld [smem:[#allocation6 + $0x182]] }
  0x2c   :  { %v1940_v39 = vrot.slane %v90_v31, 10  ;;  %v1941_v40 = vrot.slane %v91_v32, 10  ;;  %v1942_v41 = vrot.slane %v92_v33, 10  ;;  %v1943_v42 = vrot.slane %v93_v34, 10  ;;  %s2434_s8 = sld [smem:[#allocation6 + $0x183]] }
  0x2d   :  { %v80_v43 = vadd.f32 %v1935_v35, %v50_v15  ;;  %v81_v44 = vadd.f32 %v1936_v36, %v51_v16  ;;  %v82_v45 = vadd.f32 %v1937_v37, %v52_v17  ;;  %v83_v46 = vadd.f32 %v1938_v38, %v53_v18  ;;  %s2495_s9 = sld [smem:[#allocation6 + $0x200]] }
  0x2e   :  { %v2245_v47 = vstv %s2202_s0  ;;  %v2248_v48 = vstv %s2212_s24  ;;  %v2251_v49 = vstv %s2218_s25  ;;  %v2254_v50 = vstv %s2226_s26  ;;  %s2501_s10 = sld [smem:[#allocation6 + $0x201]]  ;;  %s2159_s0 = smov [#allocation7]  }
  0x2f   :  { %v110_v51 = vadd.f32 %v1940_v39, %v80_v43  ;;  %v111_v52 = vadd.f32 %v1941_v40, %v81_v44  ;;  %v112_v53 = vadd.f32 %v1942_v41, %v82_v45  ;;  %v113_v54 = vadd.f32 %v1943_v42, %v83_v46  ;;  %s2549_s11 = sld [smem:[#allocation6 + $0x202]]  ;;  %s1907_s24 = sshll.u32 %s2159_s0, 4  ;;  %s1908_s24 = int_to_ptr.vmem [resolvable:$true] %s1907_s24 }
  0x30   :  { %v116_v55 = vsub.f32 %v2192_v2, %v2245_v47  ;;  %v117_v56 = vsub.f32 %v2194_v3, %v2245_v47  ;;  %v118_v57 = vsub.f32 %v2196_v4, %v2245_v47  ;;  %v119_v58 = vsub.f32 %v2198_v5, %v2245_v47  ;;  %s2569_s12 = sld [smem:[#allocation6 + $0x203]]  ;;  %s2109_s25 = scalar_lea.vmem %s1908_s24, 1536 }
  0x31   :  { %v146_v59 = vsub.f32 %v2192_v2, %v2248_v48  ;;  %v147_v60 = vsub.f32 %v2194_v3, %v2248_v48  ;;  %v148_v61 = vsub.f32 %v2196_v4, %v2248_v48  ;;  %v149_v62 = vsub.f32 %v2198_v5, %v2248_v48  ;;  %s2606_s13 = sld [smem:[#allocation6 + $0x280]]  ;;  %p2110_p10 = scmp.ne.s32.totalorder %s1908_s24, %s2109_s25 }
  0x32   :  { %v120_v63 = vmul.f32 %v116_v55, %v116_v55  ;;  %v121_v7 = vmul.f32 %v117_v56, %v117_v56  ;;  %v122_v8 = vmul.f32 %v118_v57, %v118_v57  ;;  %v123_v9 = vmul.f32 %v119_v58, %v119_v58  ;;  %s2014_s14 = sld [smem:[#allocation6 + $0x281]]  ;;  %p2114_p11 = scmp.lt.s32.totalorder %s1908_s24, %s1908_s24 }
  0x33   :  { %v150_v10 = vmul.f32 %v146_v59, %v146_v59  ;;  %v151_v15 = vmul.f32 %v147_v60, %v147_v60  ;;  %v152_v16 = vmul.f32 %v148_v61, %v148_v61  ;;  %v153_v17 = vmul.f32 %v149_v62, %v149_v62  ;;  %s2630_s15 = sld [smem:[#allocation6 + $0x282]]  ;;  %p2115_p12 = scmp.lt.s32.totalorder %s2109_s25, %s2109_s25 }
  0x34   :  { %v1945_v18 = vrot.slane %v120_v63, 11  ;;  %v1946_v19 = vrot.slane %v121_v7, 11  ;;  %v1947_v20 = vrot.slane %v122_v8, 11  ;;  %v1948_v21 = vrot.slane %v123_v9, 11  ;;  %s2024_s16 = sld [smem:[#allocation6 + $0x283]] }
  0x35   :  { %v156_v22 = vsub.f32 %v2192_v2, %v2251_v49  ;;  %v157_v23 = vsub.f32 %v2194_v3, %v2251_v49  ;;  %v158_v24 = vsub.f32 %v2196_v4, %v2251_v49  ;;  %v159_v25 = vsub.f32 %v2198_v5, %v2251_v49  ;;  %s2667_s17 = sld [smem:[#allocation6 + $0x300]]  ;;  %p2116_p13 = por %p2115_p12, %p2114_p11 }
  0x36   :  { %v2288_v26 = vadd.f32 %v1945_v18, %v110_v51  ;;  %v2290_v27 = vadd.f32 %v1946_v19, %v111_v52  ;;  %v2292_v28 = vadd.f32 %v1947_v20, %v112_v53  ;;  %v2294_v29 = vadd.f32 %v1948_v21, %v113_v54  ;;  %s2673_s18 = sld [smem:[#allocation6 + $0x301]] }
  0x37   :  { %v160_v30 = vmul.f32 %v156_v22, %v156_v22  ;;  %v161_v31 = vmul.f32 %v157_v23, %v157_v23  ;;  %v162_v32 = vmul.f32 %v158_v24, %v158_v24  ;;  %v163_v33 = vmul.f32 %v159_v25, %v159_v25  ;;  %s2710_s19 = sld [smem:[#allocation6 + $0x302]]  ;;  %p2117_p0 = pnand %p2116_p13, %p2110_p10 }
  0x38   :  { %v186_v34 = vsub.f32 %v2192_v2, %v2254_v50  ;;  %v187_v35 = vsub.f32 %v2194_v3, %v2254_v50  ;;  %v188_v36 = vsub.f32 %v2196_v4, %v2254_v50  ;;  %v189_v37 = vsub.f32 %v2198_v5, %v2254_v50  ;;  %s2712_s20 = sld [smem:[#allocation6 + $0x303]] }
  0x39   :  { %v1951_v38 = vrot.slane %v160_v30, 9  ;;  %v1952_v39 = vrot.slane %v161_v31, 9  ;;  %v1953_v40 = vrot.slane %v162_v32, 9  ;;  %v1954_v41 = vrot.slane %v163_v33, 9  ;;  %s2763_s1 = sld [smem:[#allocation6 + $0x380]] }
  0x3a   :  { %v190_v42 = vmul.f32 %v186_v34, %v186_v34  ;;  %v191_v43 = vmul.f32 %v187_v35, %v187_v35  ;;  %v192_v44 = vmul.f32 %v188_v36, %v188_v36  ;;  %v193_v45 = vmul.f32 %v189_v37, %v189_v37  ;;  %s2809_s21 = sld [smem:[#allocation6 + $0x381]] }
  0x3b   :  { %v180_v46 = vadd.f32 %v1951_v38, %v150_v10  ;;  %v181_v51 = vadd.f32 %v1952_v39, %v151_v15  ;;  %v182_v52 = vadd.f32 %v1953_v40, %v152_v16  ;;  %v183_v53 = vadd.f32 %v1954_v41, %v153_v17  ;;  %s2818_s22 = sld [smem:[#allocation6 + $0x382]] }
  0x3c   :  { %v1956_v54 = vrot.slane %v190_v42, 10  ;;  %v1957_v55 = vrot.slane %v191_v43, 10  ;;  %v1958_v56 = vrot.slane %v192_v44, 10  ;;  %v1959_v57 = vrot.slane %v193_v45, 10  ;;  %s2056_s23 = sld [smem:[#allocation6 + $0x383]] }
  0x3d   :  { %v2305_v58 = vstv %s2272_s27  ;;  %v2308_v59 = vstv %s2274_s28  ;;  %v2311_v60 = vstv %s2276_s29  ;;  %v2314_v61 = vstv %s2286_s30 }
  0x3e   :  { %3784 = vst [vmem:[#allocation15_spill] sm:$0xff] %v2314_v61  ;;  %v210_v62 = vadd.f32 %v1956_v54, %v180_v46  ;;  %v211_v63 = vadd.f32 %v1957_v55, %v181_v51  ;;  %v212_v7 = vadd.f32 %v1958_v56, %v182_v52  ;;  %v213_v8 = vadd.f32 %v1959_v57, %v183_v53 }
  0x3f   :  { %v216_v9 = vsub.f32 %v2192_v2, %v2305_v58  ;;  %v217_v10 = vsub.f32 %v2194_v3, %v2305_v58  ;;  %v218_v15 = vsub.f32 %v2196_v4, %v2305_v58  ;;  %v219_v16 = vsub.f32 %v2198_v5, %v2305_v58 }
  0x40   :  { %v561_v17 = vsub.f32 %v2192_v2, %v2308_v59  ;;  %v562_v18 = vsub.f32 %v2194_v3, %v2308_v59  ;;  %v563_v19 = vsub.f32 %v2196_v4, %v2308_v59  ;;  %v564_v20 = vsub.f32 %v2198_v5, %v2308_v59 }
  0x41   :  { %v220_v21 = vmul.f32 %v216_v9, %v216_v9  ;;  %v221_v22 = vmul.f32 %v217_v10, %v217_v10  ;;  %v222_v23 = vmul.f32 %v218_v15, %v218_v15  ;;  %v223_v24 = vmul.f32 %v219_v16, %v219_v16 }
  0x42   :  { %v565_v25 = vmul.f32 %v561_v17, %v561_v17  ;;  %v566_v30 = vmul.f32 %v562_v18, %v562_v18  ;;  %v567_v31 = vmul.f32 %v563_v19, %v563_v19  ;;  %v568_v32 = vmul.f32 %v564_v20, %v564_v20 }
  0x43   :  { %v1961_v33 = vrot.slane %v220_v21, 11  ;;  %v1962_v34 = vrot.slane %v221_v22, 11  ;;  %v1963_v35 = vrot.slane %v222_v23, 11  ;;  %v1964_v36 = vrot.slane %v223_v24, 11 }
  0x44   :  { %v571_v37 = vsub.f32 %v2192_v2, %v2311_v60  ;;  %v572_v38 = vsub.f32 %v2194_v3, %v2311_v60  ;;  %v573_v39 = vsub.f32 %v2196_v4, %v2311_v60  ;;  %v574_v40 = vsub.f32 %v2198_v5, %v2311_v60 }
  0x45   :  { %v240_v41 = vadd.f32 %v1961_v33, %v210_v62  ;;  %v241_v42 = vadd.f32 %v1962_v34, %v211_v63  ;;  %v242_v43 = vadd.f32 %v1963_v35, %v212_v7  ;;  %v243_v44 = vadd.f32 %v1964_v36, %v213_v8 }
  0x46   :  { %v575_v45 = vmul.f32 %v571_v37, %v571_v37  ;;  %v576_v46 = vmul.f32 %v572_v38, %v572_v38  ;;  %v577_v51 = vmul.f32 %v573_v39, %v573_v39  ;;  %v578_v52 = vmul.f32 %v574_v40, %v574_v40 }
  0x47   :  { %vm2341_vm1 = vcmp.lt.f32.partialorder %v240_v41, %v2288_v26  ;;  %vm2346_vm2 = vcmp.lt.f32.partialorder %v241_v42, %v2290_v27  ;;  %vm2351_vm3 = vcmp.lt.f32.partialorder %v242_v43, %v2292_v28  ;;  %vm2356_vm4 = vcmp.lt.f32.partialorder %v243_v44, %v2294_v29 }
  0x48   :  { %v2363_v57 = vsel %vm2341_vm1, %v240_v41, %v2288_v26  ;;  %v2368_v62 = vsel %vm2346_vm2, %v241_v42, %v2290_v27  ;;  %v2373_v63 = vsel %vm2351_vm3, %v242_v43, %v2292_v28  ;;  %v2378_v7 = vsel %vm2356_vm4, %v243_v44, %v2294_v29 }
  0x49   :  { %v498_v26 = vrot.slane %v2363_v57, %v2221_v13  ;;  %v502_v8 = vrot.slane %v2363_v57, %v2224_v14  ;;  %v506_v27 = vrot.slane %v2368_v62, %v2221_v13  ;;  %v510_v28 = vrot.slane %v2368_v62, %v2224_v14 }
  0x4a   :  { %v514_v29 = vrot.slane %v2373_v63, %v2221_v13  ;;  %v518_v9 = vrot.slane %v2373_v63, %v2224_v14  ;;  %v522_v10 = vrot.slane %v2378_v7, %v2221_v13  ;;  %v526_v15 = vrot.slane %v2378_v7, %v2224_v14 }
  0x4b   :  { %v535_v16 = vsel %vm3684_vm0, %v498_v26, 0.0  ;;  %v536_v17 = vsel %vm3684_vm0, %v502_v8, 0.0  ;;  %v538_v18 = vsel %vm3684_vm0, %v506_v27, 0.0  ;;  %v540_v19 = vsel %vm3684_vm0, %v510_v28, 0.0 }
  0x4c   :  { %v537_v20 = vadd.f32 %v536_v17, %v535_v16  ;;  %v542_v21 = vsel %vm3684_vm0, %v514_v29, 0.0  ;;  %v544_v22 = vsel %vm3684_vm0, %v518_v9, 0.0  ;;  %v546_v23 = vsel %vm3684_vm0, %v522_v10, 0.0 }
  0x4d   :  { %v548_v24 = vsel %vm3684_vm0, %v526_v15, 0.0  ;;  %v1967_v33 = vrot.slane %v575_v45, 9  ;;  %v1968_v34 = vrot.slane %v576_v46, 9  ;;  %v1969_v35 = vrot.slane %v577_v51, 9 }
  0x4e   :  { %v539_v36 = vadd.f32 %v538_v18, %v537_v20  ;;  %v1970_v37 = vrot.slane %v578_v52, 9  ;;  %v601_v38 = vsub.f32 %v2192_v2, %v2314_v61  ;;  %v602_v39 = vsub.f32 %v2194_v3, %v2314_v61 }
  0x4f   :  { %v595_v40 = vadd.f32 %v1967_v33, %v565_v25  ;;  %v596_v41 = vadd.f32 %v1968_v34, %v566_v30  ;;  %v597_v42 = vadd.f32 %v1969_v35, %v567_v31  ;;  %v603_v43 = vsub.f32 %v2196_v4, %v2314_v61 }
  0x50   :  { %v541_v44 = vadd.f32 %v540_v19, %v539_v36  ;;  %v598_v45 = vadd.f32 %v1970_v37, %v568_v32  ;;  %v604_v46 = vsub.f32 %v2198_v5, %v2314_v61  ;;  %v605_v51 = vmul.f32 %v601_v38, %v601_v38 }
  0x51   :  { %v606_v26 = vmul.f32 %v602_v39, %v602_v39  ;;  %v607_v52 = vmul.f32 %v603_v43, %v603_v43  ;;  %v2417_v8 = vstv %s2380_s4  ;;  %v2420_v27 = vstv %s2390_s5 }
  0x52   :  { %3793 = vst [vmem:[#allocation16_spill] sm:$0xff] %v2417_v8  ;;  %3794 = vst [vmem:[#allocation17_spill] sm:$0xff] %v2420_v27  ;;  %v543_v28 = vadd.f32 %v542_v21, %v541_v44  ;;  %v608_v29 = vmul.f32 %v604_v46, %v604_v46  ;;  %v1972_v25 = vrot.slane %v605_v51, 10  ;;  %v631_v30 = vsub.f32 %v2192_v2, %v2417_v8 }
  0x53   :  { %v1973_v31 = vrot.slane %v606_v26, 10  ;;  %v1974_v9 = vrot.slane %v607_v52, 10  ;;  %v632_v32 = vsub.f32 %v2194_v3, %v2417_v8  ;;  %v633_v10 = vsub.f32 %v2196_v4, %v2417_v8 }
  0x54   :  { %v545_v15 = vadd.f32 %v544_v22, %v543_v28  ;;  %v1975_v16 = vrot.slane %v608_v29, 10  ;;  %v625_v17 = vadd.f32 %v1972_v25, %v595_v40  ;;  %v634_v18 = vsub.f32 %v2198_v5, %v2417_v8 }
  0x55   :  { %v626_v19 = vadd.f32 %v1973_v31, %v596_v41  ;;  %v627_v20 = vadd.f32 %v1974_v9, %v597_v42  ;;  %v635_v21 = vmul.f32 %v631_v30, %v631_v30  ;;  %v636_v33 = vmul.f32 %v632_v32, %v632_v32 }
  0x56   :  { %v547_v34 = vadd.f32 %v546_v23, %v545_v15  ;;  %v628_v35 = vadd.f32 %v1975_v16, %v598_v45  ;;  %v637_v36 = vmul.f32 %v633_v10, %v633_v10  ;;  %v638_v37 = vmul.f32 %v634_v18, %v634_v18 }
  0x57   :  { %v1977_v38 = vrot.slane %v635_v21, 11  ;;  %v1978_v39 = vrot.slane %v636_v33, 11  ;;  %v685_v22 = vsub.f32 %v2192_v2, %v2420_v27  ;;  %v686_v40 = vsub.f32 %v2194_v3, %v2420_v27 }
  0x58   :  { %v549_v41 = vadd.f32 %v548_v24, %v547_v34  ;;  %v1979_v42 = vrot.slane %v637_v36, 11  ;;  %v1980_v43 = vrot.slane %v638_v37, 11  ;;  %v687_v23 = vsub.f32 %v2196_v4, %v2420_v27 }
  0x59   :  { %v655_v44 = vadd.f32 %v1977_v38, %v625_v17  ;;  %v656_v45 = vadd.f32 %v1978_v39, %v626_v19  ;;  %v688_v46 = vsub.f32 %v2198_v5, %v2420_v27  ;;  %v689_v28 = vmul.f32 %v685_v22, %v685_v22 }
  0x5a   :  { %550 = vadd.xlane.f32.xlu0 %v549_v41  ;;  %v657_v51 = vadd.f32 %v1979_v42, %v627_v20  ;;  %v658_v26 = vadd.f32 %v1980_v43, %v628_v35  ;;  %v2455_v29 = vstv %s2428_s6  ;;  %v690_v30 = vmul.f32 %v686_v40, %v686_v40 }
  0x5b   :  { %vm2445_vm5 = vcmp.lt.f32.partialorder %v655_v44, %v2363_v57  ;;  %vm2450_vm6 = vcmp.lt.f32.partialorder %v656_v45, %v2368_v62  ;;  %3799 = vst [vmem:[#allocation18_spill] sm:$0xff] %v2455_v29  ;;  %v691_v31 = vmul.f32 %v687_v23, %v687_v23  ;;  %v692_v9 = vmul.f32 %v688_v46, %v688_v46 }
  0x5c   :  { %vm2458_vm7 = vcmp.lt.f32.partialorder %v657_v51, %v2373_v63  ;;  %v2465_v32 = vsel %vm2445_vm5, %v655_v44, %v2363_v57  ;;  %v2470_v10 = vsel %vm2450_vm6, %v656_v45, %v2368_v62  ;;  %v695_v15 = vsub.f32 %v2192_v2, %v2455_v29 }
  0x5d   :  { %v696_v16 = vsub.f32 %v2194_v3, %v2455_v29  ;;  %vm2477_vm8 = vcmp.lt.f32.partialorder %v658_v26, %v2378_v7  ;;  %v697_v57 = vsub.f32 %v2196_v4, %v2455_v29  ;;  %v698_v18 = vsub.f32 %v2198_v5, %v2455_v29 }
  0x5e   :  { %v2486_v19 = vstv %s2432_s7  ;;  %v2489_v62 = vstv %s2434_s8  ;;  %v699_v20 = vmul.f32 %v695_v15, %v695_v15  ;;  %v2715_v27 = vstv %s2673_s18 }
  0x5f   :  { %3804 = vst [vmem:[#allocation19_spill] sm:$0xff] %v2486_v19  ;;  %3805 = vst [vmem:[#allocation20_spill] sm:$0xff] %v2489_v62  ;;  %v700_v21 = vmul.f32 %v696_v16, %v696_v16  ;;  %v725_v33 = vsub.f32 %v2192_v2, %v2486_v19  ;;  %v726_v34 = vsub.f32 %v2194_v3, %v2486_v19  ;;  %v3861_v61 = vmov 0 }
  0x60   :  { %v701_v35 = vmul.f32 %v697_v57, %v697_v57  ;;  %v702_v36 = vmul.f32 %v698_v18, %v698_v18  ;;  %v727_v37 = vsub.f32 %v2196_v4, %v2486_v19  ;;  %v728_v38 = vsub.f32 %v2198_v5, %v2486_v19  ;;  %3839 = vst [vmem:[#allocation38_spill] sm:$0xff] %v2715_v27 }
  0x61   :  { %v1983_v39 = vrot.slane %v699_v20, 9  ;;  %v1984_v22 = vrot.slane %v700_v21, 9  ;;  %v729_v40 = vmul.f32 %v725_v33, %v725_v33  ;;  %v730_v41 = vmul.f32 %v726_v34, %v726_v34 }
  0x62   :  { %v1985_v42 = vrot.slane %v701_v35, 9  ;;  %v1986_v43 = vrot.slane %v702_v36, 9  ;;  %v731_v23 = vmul.f32 %v727_v37, %v727_v37  ;;  %v732_v44 = vmul.f32 %v728_v38, %v728_v38 }
  0x63   :  { %v719_v45 = vadd.f32 %v1983_v39, %v689_v28  ;;  %v720_v46 = vadd.f32 %v1984_v22, %v690_v30  ;;  %v1988_v15 = vrot.slane %v729_v40, 10  ;;  %v1989_v16 = vrot.slane %v730_v41, 10 }
  0x64   :  { %v721_v57 = vadd.f32 %v1985_v42, %v691_v31  ;;  %v722_v18 = vadd.f32 %v1986_v43, %v692_v9  ;;  %v1990_v0 = vrot.slane %v731_v23, 10  ;;  %v1991_v1 = vrot.slane %v732_v44, 10 }
  0x65   :  { %v665_v20 = vsel %vm2458_vm7, %v657_v51, %v2373_v63  ;;  %v749_v21 = vadd.f32 %v1988_v15, %v719_v45  ;;  %v755_v33 = vsub.f32 %v2192_v2, %v2489_v62  ;;  %v756_v34 = vsub.f32 %v2194_v3, %v2489_v62 }
  0x66   :  { %v750_v28 = vadd.f32 %v1989_v16, %v720_v46  ;;  %v751_v30 = vadd.f32 %v1990_v0, %v721_v57  ;;  %v757_v31 = vsub.f32 %v2196_v4, %v2489_v62  ;;  %v758_v9 = vsub.f32 %v2198_v5, %v2489_v62 }
  0x67   :  { %v752_v35 = vadd.f32 %v1991_v1, %v722_v18  ;;  %v759_v36 = vmul.f32 %v755_v33, %v755_v33  ;;  %v760_v37 = vmul.f32 %v756_v34, %v756_v34  ;;  %v2515_v63 = vstv %s2495_s9 }
  0x68   :  { %3806 = vst [vmem:[#allocation21_spill] sm:$0xff] %v2515_v63  ;;  %v761_v51 = vmul.f32 %v757_v31, %v757_v31  ;;  %v762_v38 = vmul.f32 %v758_v9, %v758_v9  ;;  %v1098_v39 = vsub.f32 %v2192_v2, %v2515_v63  ;;  %v1099_v22 = vsub.f32 %v2194_v3, %v2515_v63 }
  0x69   :  { %v666_v0 = vsel %vm2477_vm8, %v658_v26, %v2378_v7  ;;  %v1993_v40 = vrot.slane %v759_v36, 11  ;;  %v1994_v41 = vrot.slane %v760_v37, 11  ;;  %v2525_v42 = vstv %s2501_s10 }
  0x6a   :  { %3807 = vst [vmem:[#allocation22_spill] sm:$0xff] %v2525_v42  ;;  %v1995_v1 = vrot.slane %v761_v51, 11  ;;  %v1996_v43 = vrot.slane %v762_v38, 11  ;;  %v1100_v23 = vsub.f32 %v2196_v4, %v2515_v63  ;;  %v1101_v44 = vsub.f32 %v2198_v5, %v2515_v63 }
  0x6b   :  { %v779_v45 = vadd.f32 %v1993_v40, %v749_v21  ;;  %v780_v46 = vadd.f32 %v1994_v41, %v750_v28  ;;  %v1102_v15 = vmul.f32 %v1098_v39, %v1098_v39  ;;  %v1103_v16 = vmul.f32 %v1099_v22, %v1099_v22 }
  0x6c   :  { %v781_v57 = vadd.f32 %v1995_v1, %v751_v30  ;;  %v782_v18 = vadd.f32 %v1996_v43, %v752_v35  ;;  %v1108_v7 = vsub.f32 %v2192_v2, %v2525_v42  ;;  %v1109_v26 = vsub.f32 %v2194_v3, %v2525_v42 }
  0x6d   :  { %vm2536_vm9 = vcmp.lt.f32.partialorder %v779_v45, %v2465_v32  ;;  %v3808_v33 = vmov 0  ;;  %vm2541_vm10 = vcmp.lt.f32.partialorder %v780_v46, %v2470_v10  ;;  %v3811_v34 = vmov 0 }
  0x6e   :  { %v3809_v33 = vsel %vm2536_vm9, 4294967295, %v3808_v33  ;;  %v3812_v34 = vsel %vm2541_vm10, 4294967295, %v3811_v34  ;;  %v1110_v21 = vsub.f32 %v2196_v4, %v2525_v42  ;;  %v1111_v28 = vsub.f32 %v2198_v5, %v2525_v42 }
  0x6f   :  { %3810 = vst [vmem:[#allocation23_spill] sm:$0xff] %v3809_v33  ;;  %3813 = vst [vmem:[#allocation24_spill] sm:$0xff] %v3812_v34  ;;  %vm2551_vm11 = vcmp.lt.f32.partialorder %v781_v57, %v665_v20  ;;  %v3814_v30 = vmov 0  ;;  %vm2555_vm12 = vcmp.lt.f32.partialorder %v782_v18, %v666_v0  ;;  %v3817_v31 = vmov 0 }
  0x70   :  { %v3815_v30 = vsel %vm2551_vm11, 4294967295, %v3814_v30  ;;  %v3818_v31 = vsel %vm2555_vm12, 4294967295, %v3817_v31  ;;  %v2562_v9 = vsel %vm2536_vm9, %v779_v45, %v2465_v32  ;;  %v2567_v35 = vsel %vm2541_vm10, %v780_v46, %v2470_v10 }
  0x71   :  { %3816 = vst [vmem:[#allocation25_spill] sm:$0xff] %v3815_v30  ;;  %3819 = vst [vmem:[#allocation26_spill] sm:$0xff] %v3818_v31  ;;  %v2573_v36 = vsel %vm2551_vm11, %v781_v57, %v665_v20  ;;  %v2577_v37 = vsel %vm2555_vm12, %v782_v18, %v666_v0  ;;  %v1035_v51 = vrot.slane %v2562_v9, %v2221_v13 }
  0x72   :  { %v1039_v32 = vrot.slane %v2562_v9, %v2224_v14  ;;  %v1043_v10 = vrot.slane %v2567_v35, %v2221_v13  ;;  %v1047_v38 = vrot.slane %v2567_v35, %v2224_v14  ;;  %v1051_v20 = vrot.slane %v2573_v36, %v2221_v13 }
  0x73   :  { %v1055_v39 = vrot.slane %v2573_v36, %v2224_v14  ;;  %v1059_v22 = vrot.slane %v2577_v37, %v2221_v13  ;;  %v1063_v0 = vrot.slane %v2577_v37, %v2224_v14  ;;  %v1072_v40 = vsel %vm3684_vm0, %v1035_v51, 0.0 }
  0x74   :  { %v1073_v41 = vsel %vm3684_vm0, %v1039_v32, 0.0  ;;  %v1075_v43 = vsel %vm3684_vm0, %v1043_v10, 0.0  ;;  %v1104_v45 = vmul.f32 %v1100_v23, %v1100_v23  ;;  %v1105_v46 = vmul.f32 %v1101_v44, %v1101_v44 }
  0x75   :  { %v1074_v1 = vadd.f32 %v1073_v41, %v1072_v40  ;;  %v1077_v57 = vsel %vm3684_vm0, %v1047_v38, 0.0  ;;  %v1079_v18 = vsel %vm3684_vm0, %v1051_v20, 0.0  ;;  %v1081_v42 = vsel %vm3684_vm0, %v1055_v39, 0.0 }
  0x76   :  { %v1112_v63 = vmul.f32 %v1108_v7, %v1108_v7  ;;  %v1113_v19 = vmul.f32 %v1109_v26, %v1109_v26  ;;  %v1114_v29 = vmul.f32 %v1110_v21, %v1110_v21  ;;  %v1115_v51 = vmul.f32 %v1111_v28, %v1111_v28 }
  0x77   :  { %v1076_v62 = vadd.f32 %v1075_v43, %v1074_v1  ;;  %v1083_v32 = vsel %vm3684_vm0, %v1059_v22, 0.0  ;;  %v1085_v40 = vsel %vm3684_vm0, %v1063_v0, 0.0  ;;  %v2604_v10 = vstv %s2549_s11 }
  0x78   :  { %v1999_v41 = vrot.slane %v1112_v63, 9  ;;  %3820 = vst [vmem:[#allocation27_spill] sm:$0xff] %v2604_v10  ;;  %v2000_v44 = vrot.slane %v1113_v19, 9  ;;  %v2001_v38 = vrot.slane %v1114_v29, 9  ;;  %v2609_v20 = vstv %s2569_s12 }
  0x79   :  { %v1078_v23 = vadd.f32 %v1077_v57, %v1076_v62  ;;  %3821 = vst [vmem:[#allocation28_spill] sm:$0xff] %v2609_v20  ;;  %v2002_v39 = vrot.slane %v1115_v51, 9  ;;  %v1138_v7 = vsub.f32 %v2192_v2, %v2604_v10  ;;  %v1139_v26 = vsub.f32 %v2194_v3, %v2604_v10 }
  0x7a   :  { %v1140_v21 = vsub.f32 %v2196_v4, %v2604_v10  ;;  %v1132_v28 = vadd.f32 %v1999_v41, %v1102_v15  ;;  %v1133_v22 = vadd.f32 %v2000_v44, %v1103_v16  ;;  %v1134_v0 = vadd.f32 %v2001_v38, %v1104_v45 }
  0x7b   :  { %v1080_v63 = vadd.f32 %v1079_v18, %v1078_v23  ;;  %v1141_v19 = vsub.f32 %v2198_v5, %v2604_v10  ;;  %v1142_v29 = vmul.f32 %v1138_v7, %v1138_v7  ;;  %v1143_v62 = vmul.f32 %v1139_v26, %v1139_v26 }
  0x7c   :  { %v1144_v1 = vmul.f32 %v1140_v21, %v1140_v21  ;;  %v1168_v57 = vsub.f32 %v2192_v2, %v2609_v20  ;;  %v1169_v51 = vsub.f32 %v2194_v3, %v2609_v20  ;;  %v1170_v18 = vsub.f32 %v2196_v4, %v2609_v20 }
  0x7d   :  { %v1082_v43 = vadd.f32 %v1081_v42, %v1080_v63  ;;  %v1145_v15 = vmul.f32 %v1141_v19, %v1141_v19  ;;  %v2004_v16 = vrot.slane %v1142_v29, 10  ;;  %v2005_v45 = vrot.slane %v1143_v62, 10 }
  0x7e   :  { %v2006_v41 = vrot.slane %v1144_v1, 10  ;;  %v1171_v44 = vsub.f32 %v2198_v5, %v2609_v20  ;;  %v1172_v38 = vmul.f32 %v1168_v57, %v1168_v57  ;;  %v1173_v42 = vmul.f32 %v1169_v51, %v1169_v51 }
  0x7f   :  { %v1084_v23 = vadd.f32 %v1083_v32, %v1082_v43  ;;  %v1135_v7 = vadd.f32 %v2002_v39, %v1105_v46  ;;  %v2007_v26 = vrot.slane %v1145_v15, 10  ;;  %v2628_v21 = vstv %s2606_s13 }
  0x80   :  { %3822 = vst [vmem:[#allocation29_spill] sm:$0xff] %v2628_v21  ;;  %v1174_v10 = vmul.f32 %v1170_v18, %v1170_v18  ;;  %v1175_v31 = vmul.f32 %v1171_v44, %v1171_v44  ;;  %v1162_v19 = vadd.f32 %v2004_v16, %v1132_v28  ;;  %v1163_v29 = vadd.f32 %v2005_v45, %v1133_v22 }
  0x81   :  { %v1086_v63 = vadd.f32 %v1085_v40, %v1084_v23  ;;  %v2009_v62 = vrot.slane %v1172_v38, 11  ;;  %v2010_v1 = vrot.slane %v1173_v42, 11  ;;  %v1164_v32 = vadd.f32 %v2006_v41, %v1134_v0 }
  0x82   :  { %v2011_v43 = vrot.slane %v1174_v10, 11  ;;  %v1222_v57 = vsub.f32 %v2192_v2, %v2628_v21  ;;  %v1223_v46 = vsub.f32 %v2194_v3, %v2628_v21  ;;  %v1165_v39 = vadd.f32 %v2007_v26, %v1135_v7 }
  0x83   :  { %1087 = vadd.xlane.f32.xlu0 %v1086_v63  ;;  %v2012_v51 = vrot.slane %v1175_v31, 11  ;;  %v1224_v40 = vsub.f32 %v2196_v4, %v2628_v21  ;;  %v2638_v18 = vadd.f32 %v2009_v62, %v1162_v19  ;;  %v2640_v28 = vadd.f32 %v2010_v1, %v1163_v29 }
  0x84   :  { %v1225_v22 = vsub.f32 %v2198_v5, %v2628_v21  ;;  %v2644_v10 = vstv %s2014_s14  ;;  %v2646_v0 = vadd.f32 %v2011_v43, %v1164_v32  ;;  %v1226_v15 = vmul.f32 %v1222_v57, %v1222_v57 }
  0x85   :  { %3823 = vst [vmem:[#allocation30_spill] sm:$0xff] %v2644_v10  ;;  %v1227_v16 = vmul.f32 %v1223_v46, %v1223_v46  ;;  %v1232_v31 = vsub.f32 %v2192_v2, %v2644_v10  ;;  %v2650_v45 = vadd.f32 %v2012_v51, %v1165_v39  ;;  %v1228_v41 = vmul.f32 %v1224_v40, %v1224_v40 }
  0x86   :  { %v1233_v23 = vsub.f32 %v2194_v3, %v2644_v10  ;;  %v1234_v44 = vsub.f32 %v2196_v4, %v2644_v10  ;;  %v1235_v38 = vsub.f32 %v2198_v5, %v2644_v10  ;;  %v2659_v7 = vstv %s2630_s15 }
  0x87   :  { %v1236_v42 = vmul.f32 %v1232_v31, %v1232_v31  ;;  %3824 = vst [vmem:[#allocation31_spill] sm:$0xff] %v2659_v7  ;;  %v2661_v26 = vstv %s2024_s16  ;;  %v1262_v29 = vsub.f32 %v2192_v2, %v2659_v7  ;;  %v1263_v62 = vsub.f32 %v2194_v3, %v2659_v7 }
  0x88   :  { %3825 = vst [vmem:[#allocation32_spill] sm:$0xff] %v2661_v26  ;;  %v1237_v63 = vmul.f32 %v1233_v23, %v1233_v23  ;;  %v1238_v19 = vmul.f32 %v1234_v44, %v1234_v44  ;;  %v1239_v1 = vmul.f32 %v1235_v38, %v1235_v38  ;;  %v1264_v43 = vsub.f32 %v2196_v4, %v2659_v7 }
  0x89   :  { %v2015_v32 = vrot.slane %v1236_v42, 9  ;;  %v1265_v57 = vsub.f32 %v2198_v5, %v2659_v7  ;;  %v1266_v51 = vmul.f32 %v1262_v29, %v1262_v29  ;;  %v1267_v40 = vmul.f32 %v1263_v62, %v1263_v62 }
  0x8a   :  { %v2016_v46 = vrot.slane %v1237_v63, 9  ;;  %v2017_v39 = vrot.slane %v1238_v19, 9  ;;  %vm2677_vm13 = vcmp.lt.f32.partialorder %v2638_v18, %v2562_v9  ;;  %v3826_v31 = vmov 0 }
  0x8b   :  { %v3827_v31 = vsel %vm2677_vm13, 4294967295, %v3826_v31  ;;  %v1229_v23 = vmul.f32 %v1225_v22, %v1225_v22  ;;  %v2018_v44 = vrot.slane %v1239_v1, 9  ;;  %v1268_v38 = vmul.f32 %v1264_v43, %v1264_v43 }
  0x8c   :  { %3828 = vst [vmem:[#allocation33_spill] sm:$0xff] %v3827_v31  ;;  %v1256_v42 = vadd.f32 %v2015_v32, %v1226_v15  ;;  %v1257_v10 = vadd.f32 %v2016_v46, %v1227_v16  ;;  %v1258_v21 = vadd.f32 %v2017_v39, %v1228_v41  ;;  %v1269_v20 = vmul.f32 %v1265_v57, %v1265_v57 }
  0x8d   :  { %v2020_v63 = vrot.slane %v1266_v51, 10  ;;  %v2021_v19 = vrot.slane %v1267_v40, 10  ;;  %v2022_v29 = vrot.slane %v1268_v38, 10  ;;  %v1292_v62 = vsub.f32 %v2192_v2, %v2661_v26 }
  0x8e   :  { %vm2685_vm14 = vcmp.lt.f32.partialorder %v2640_v28, %v2567_v35  ;;  %v3829_v7 = vmov 0  ;;  %vm2691_vm15 = vcmp.lt.f32.partialorder %v2646_v0, %v2573_v36  ;;  %v3832_v22 = vmov 0 }
  0x8f   :  { %v3830_v7 = vsel %vm2685_vm14, 4294967295, %v3829_v7  ;;  %v3833_v22 = vsel %vm2691_vm15, 4294967295, %v3832_v22  ;;  %v1293_v15 = vsub.f32 %v2194_v3, %v2661_v26  ;;  %v1294_v16 = vsub.f32 %v2196_v4, %v2661_v26 }
  0x90   :  { %3831 = vst [vmem:[#allocation34_spill] sm:$0xff] %v3830_v7  ;;  %3834 = vst [vmem:[#allocation35_spill] sm:$0xff] %v3833_v22  ;;  %vm2701_vm0 = vcmp.lt.f32.partialorder %v2650_v45, %v2577_v37  ;;  %v3835_v41 = vmov 0  ;;  %v1259_v1 = vadd.f32 %v2018_v44, %v1229_v23  ;;  %v1295_v32 = vsub.f32 %v2198_v5, %v2661_v26 }
  0x91   :  { %v3836_v41 = vsel %vm2701_vm0, 4294967295, %v3835_v41  ;;  %v1296_v43 = vmul.f32 %v1292_v62, %v1292_v62  ;;  %v2023_v57 = vrot.slane %v1269_v20, 10  ;;  %v1297_v46 = vmul.f32 %v1293_v15, %v1293_v15 }
  0x92   :  { %3837 = vst [vmem:[#allocation36_spill] sm:$0xff] %v3836_v41  ;;  %v1298_v39 = vmul.f32 %v1294_v16, %v1294_v16  ;;  %v2708_v51 = vstv %s2667_s17  ;;  %v1286_v40 = vadd.f32 %v2020_v63, %v1256_v42  ;;  %v1287_v38 = vadd.f32 %v2021_v19, %v1257_v10 }
  0x93   :  { %3838 = vst [vmem:[#allocation37_spill] sm:$0xff] %v2708_v51  ;;  %v1288_v30 = vadd.f32 %v2022_v29, %v1258_v21  ;;  %v1299_v34 = vmul.f32 %v1295_v32, %v1295_v32  ;;  %v2025_v33 = vrot.slane %v1296_v43, 11  ;;  %v2026_v23 = vrot.slane %v1297_v46, 11 }
  0x94   :  { %v2027_v44 = vrot.slane %v1298_v39, 11  ;;  %v2721_v20 = vsel %vm2677_vm13, %v2638_v18, %v2562_v9  ;;  %v1346_v62 = vsub.f32 %v2192_v2, %v2708_v51  ;;  %v1347_v21 = vsub.f32 %v2194_v3, %v2708_v51 }
  0x95   :  { %v1348_v10 = vsub.f32 %v2196_v4, %v2708_v51  ;;  %v2733_v42 = vsel %vm2685_vm14, %v2640_v28, %v2567_v35  ;;  %v2739_v9 = vsel %vm2691_vm15, %v2646_v0, %v2573_v36  ;;  %v2745_v18 = vsel %vm2701_vm0, %v2650_v45, %v2577_v37 }
  0x96   :  { %v1349_v63 = vsub.f32 %v2198_v5, %v2708_v51  ;;  %v1289_v19 = vadd.f32 %v2023_v57, %v1259_v1  ;;  %v2028_v29 = vrot.slane %v1299_v34, 11  ;;  %v1356_v35 = vsub.f32 %v2192_v2, %v2715_v27 }
  0x97   :  { %v1357_v28 = vsub.f32 %v2194_v3, %v2715_v27  ;;  %v2753_v36 = vadd.f32 %v2025_v33, %v1286_v40  ;;  %v2755_v0 = vadd.f32 %v2026_v23, %v1287_v38  ;;  %v2757_v15 = vadd.f32 %v2027_v44, %v1288_v30 }
  0x98   :  { %v1358_v37 = vsub.f32 %v2196_v4, %v2715_v27  ;;  %v1350_v45 = vmul.f32 %v1346_v62, %v1346_v62  ;;  %v1351_v16 = vmul.f32 %v1347_v21, %v1347_v21  ;;  %v1352_v34 = vmul.f32 %v1348_v10, %v1348_v10 }
  0x99   :  { %v1359_v1 = vsub.f32 %v2198_v5, %v2715_v27  ;;  %v1353_v32 = vmul.f32 %v1349_v63, %v1349_v63  ;;  %v1360_v43 = vmul.f32 %v1356_v35, %v1356_v35  ;;  %v1361_v57 = vmul.f32 %v1357_v28, %v1357_v28 }
  0x9a   :  { %v1362_v46 = vmul.f32 %v1358_v37, %v1358_v37  ;;  %v1319_v33 = vadd.f32 %v2028_v29, %v1289_v19  ;;  %v2766_v40 = vstv %s2710_s19  ;;  %v2769_v30 = vstv %s2712_s20 }
  0x9b   :  { %v1363_v39 = vmul.f32 %v1359_v1, %v1359_v1  ;;  %3840 = vst [vmem:[#allocation39_spill] sm:$0xff] %v2766_v40  ;;  %3841 = vst [vmem:[#allocation40_spill] sm:$0xff] %v2769_v30  ;;  %vm2773_vm0 = vcmp.lt.f32.partialorder %v2753_v36, %v2721_v20  ;;  %v3842_v38 = vmov 0  ;;  %vm2779_vm15 = vcmp.lt.f32.partialorder %v2755_v0, %v2733_v42 }
  0x9c   :  { %v3843_v38 = vsel %vm2773_vm0, 4294967295, %v3842_v38  ;;  %v3845_v23 = vmov 0  ;;  %vm2785_vm14 = vcmp.lt.f32.partialorder %v2757_v15, %v2739_v9  ;;  %v3848_v44 = vmov 0 }
  0x9d   :  { %3844 = vst [vmem:[#allocation41_spill] sm:$0xff] %v3843_v38  ;;  %v3846_v23 = vsel %vm2779_vm15, 4294967295, %v3845_v23  ;;  %v3849_v44 = vsel %vm2785_vm14, 4294967295, %v3848_v44  ;;  %v2031_v62 = vrot.slane %v1360_v43, 9  ;;  %v2032_v21 = vrot.slane %v1361_v57, 9 }
  0x9e   :  { %3847 = vst [vmem:[#allocation42_spill] sm:$0xff] %v3846_v23  ;;  %3850 = vst [vmem:[#allocation43_spill] sm:$0xff] %v3849_v44  ;;  %v2033_v10 = vrot.slane %v1362_v46, 9  ;;  %v1386_v63 = vsub.f32 %v2192_v2, %v2766_v40  ;;  %v2034_v19 = vrot.slane %v1363_v39, 9  ;;  %v1387_v29 = vsub.f32 %v2194_v3, %v2766_v40  ;;  %v2797_v2 = vld [vmem:[#allocation2] sm:$0xff]  ;;  %v2801_v39 = vld [vmem:[#allocation2 + $0x8] sm:$0xff] }
  0x9f   :  { %v1388_v35 = vsub.f32 %v2196_v4, %v2766_v40  ;;  %v1389_v28 = vsub.f32 %v2198_v5, %v2766_v40  ;;  %v1380_v37 = vadd.f32 %v2031_v62, %v1350_v45  ;;  %v1381_v1 = vadd.f32 %v2032_v21, %v1351_v16  ;;  %v2805_v5 = vld [vmem:[#allocation2 + $0x10] sm:$0xff] }
  0xa0   :  { %v1382_v27 = vadd.f32 %v2033_v10, %v1352_v34  ;;  %v1390_v51 = vmul.f32 %v1386_v63, %v1386_v63  ;;  %v1383_v43 = vadd.f32 %v2034_v19, %v1353_v32  ;;  %v1391_v57 = vmul.f32 %v1387_v29, %v1387_v29  ;;  %v2811_v32 = vld [vmem:[#allocation2 + $0x18] sm:$0xff] }
  0xa1   :  { %v1392_v46 = vmul.f32 %v1388_v35, %v1388_v35  ;;  %v1393_v26 = vmul.f32 %v1389_v28, %v1389_v28  ;;  %v1416_v3 = vsub.f32 %v2797_v2, %v2769_v30  ;;  %v1417_v4 = vsub.f32 %v2801_v39, %v2769_v30 }
  0xa2   :  { %v2036_v41 = vrot.slane %v1390_v51, 10  ;;  %v1418_v45 = vsub.f32 %v2805_v5, %v2769_v30  ;;  %v2037_v16 = vrot.slane %v1391_v57, 10  ;;  %v1419_v62 = vsub.f32 %v2811_v32, %v2769_v30 }
  0xa3   :  { %v2038_v51 = vrot.slane %v1392_v46, 10  ;;  %v2039_v34 = vrot.slane %v1393_v26, 10  ;;  %v1420_v21 = vmul.f32 %v1416_v3, %v1416_v3  ;;  %v1421_v10 = vmul.f32 %v1417_v4, %v1417_v4 }
  0xa4   :  { %v1422_v63 = vmul.f32 %v1418_v45, %v1418_v45  ;;  %v2816_v19 = vstv %s2763_s1  ;;  %vm2821_vm13 = vcmp.lt.f32.partialorder %v1319_v33, %v2745_v18  ;;  %v3852_v29 = vmov 0 }
  0xa5   :  { %3851 = vst [vmem:[#allocation44_spill] sm:$0xff] %v2816_v19  ;;  %v3853_v29 = vsel %vm2821_vm13, 4294967295, %v3852_v29  ;;  %v1410_v35 = vadd.f32 %v2036_v41, %v1380_v37  ;;  %v1411_v28 = vadd.f32 %v2037_v16, %v1381_v1  ;;  %v1423_v26 = vmul.f32 %v1419_v62, %v1419_v62 }
  0xa6   :  { %3854 = vst [vmem:[#allocation45_spill] sm:$0xff] %v3853_v29  ;;  %v1412_v57 = vadd.f32 %v2038_v51, %v1382_v27  ;;  %v1413_v46 = vadd.f32 %v2039_v34, %v1383_v43  ;;  %v2041_v30 = vrot.slane %v1420_v21, 11  ;;  %v2042_v3 = vrot.slane %v1421_v10, 11 }
  0xa7   :  { %v2043_v4 = vrot.slane %v1422_v63, 11  ;;  %v2044_v45 = vrot.slane %v1423_v26, 11  ;;  %v1470_v40 = vsub.f32 %v2797_v2, %v2816_v19  ;;  %v1471_v22 = vsub.f32 %v2801_v39, %v2816_v19 }
  0xa8   :  { %v1472_v7 = vsub.f32 %v2805_v5, %v2816_v19  ;;  %v2835_v27 = vsel %vm2773_vm0, %v2753_v36, %v2721_v20  ;;  %v2841_v41 = vsel %vm2779_vm15, %v2755_v0, %v2733_v42  ;;  %v2847_v37 = vsel %vm2785_vm14, %v2757_v15, %v2739_v9 }
  0xa9   :  { %v1473_v1 = vsub.f32 %v2811_v32, %v2816_v19  ;;  %v2854_v20 = vsel %vm2821_vm13, %v1319_v33, %v2745_v18  ;;  %v1440_v36 = vadd.f32 %v2041_v30, %v1410_v35  ;;  %v1441_v43 = vadd.f32 %v2042_v3, %v1411_v28 }
  0xaa   :  { %v2857_v16 = vstv %s2809_s21  ;;  %v1442_v42 = vadd.f32 %v2043_v4, %v1412_v57  ;;  %v1443_v0 = vadd.f32 %v2044_v45, %v1413_v46  ;;  %v1474_v51 = vmul.f32 %v1470_v40, %v1470_v40 }
  0xab   :  { %3855 = vst [vmem:[#allocation46_spill] sm:$0xff] %v2857_v16  ;;  %v1475_v34 = vmul.f32 %v1471_v22, %v1471_v22  ;;  %v1476_v62 = vmul.f32 %v1472_v7, %v1472_v7  ;;  %v1480_v9 = vsub.f32 %v2797_v2, %v2857_v16  ;;  %v1481_v15 = vsub.f32 %v2801_v39, %v2857_v16 }
  0xac   :  { %v1482_v21 = vsub.f32 %v2805_v5, %v2857_v16  ;;  %v1477_v18 = vmul.f32 %v1473_v1, %v1473_v1  ;;  %v1483_v33 = vsub.f32 %v2811_v32, %v2857_v16  ;;  %v2868_v30 = vstv %s2818_s22 }
  0xad   :  { %3856 = vst [vmem:[#allocation47_spill] sm:$0xff] %v2868_v30  ;;  %v2870_v10 = vstv %s2056_s23  ;;  %vm2873_vm13 = vcmp.lt.f32.partialorder %v1440_v36, %v2835_v27  ;;  %v3858_v7 = vmov 0  ;;  %v1484_v22 = vmul.f32 %v1480_v9, %v1480_v9 }
  0xae   :  { %3857 = vst [vmem:[#allocation48_spill] sm:$0xff] %v2870_v10  ;;  %v3859_v7 = vsel %vm2873_vm13, 4294967295, %v3858_v7  ;;  %v1485_v40 = vmul.f32 %v1481_v15, %v1481_v15  ;;  %v1486_v63 = vmul.f32 %v1482_v21, %v1482_v21  ;;  %v1510_v35 = vsub.f32 %v2797_v2, %v2868_v30 }
  0xaf   :  { %3860 = vst [vmem:[#allocation49_spill] sm:$0xff] %v3859_v7  ;;  %v1487_v28 = vmul.f32 %v1483_v33, %v1483_v33  ;;  %v1511_v26 = vsub.f32 %v2801_v39, %v2868_v30  ;;  %v1512_v57 = vsub.f32 %v2805_v5, %v2868_v30  ;;  %v1513_v46 = vsub.f32 %v2811_v32, %v2868_v30 }
  0xb0   :  { %v2047_v3 = vrot.slane %v1484_v22, 9  ;;  %v2048_v4 = vrot.slane %v1485_v40, 9  ;;  %v2049_v45 = vrot.slane %v1486_v63, 9  ;;  %v1514_v1 = vmul.f32 %v1510_v35, %v1510_v35 }
  0xb1   :  { %v2050_v9 = vrot.slane %v1487_v28, 9  ;;  %v1515_v15 = vmul.f32 %v1511_v26, %v1511_v26  ;;  %v1516_v21 = vmul.f32 %v1512_v57, %v1512_v57  ;;  %v1517_v16 = vmul.f32 %v1513_v46, %v1513_v46 }
  0xb2   :  { %v1504_v19 = vadd.f32 %v2047_v3, %v1474_v51  ;;  %v1505_v29 = vadd.f32 %v2048_v4, %v1475_v34  ;;  %v1506_v33 = vadd.f32 %v2049_v45, %v1476_v62  ;;  %v2052_v44 = vrot.slane %v1514_v1, 10 }
  0xb3   :  { %v1507_v23 = vadd.f32 %v2050_v9, %v1477_v18  ;;  %v2053_v38 = vrot.slane %v1515_v15, 10  ;;  %v2054_v31 = vrot.slane %v1516_v21, 10  ;;  %v2055_v8 = vrot.slane %v1517_v16, 10 }
  0xb4   :  { %vm2886_vm14 = vcmp.lt.f32.partialorder %v1441_v43, %v2841_v41  ;;  %v1540_v22 = vsub.f32 %v2797_v2, %v2870_v10  ;;  %v1541_v40 = vsub.f32 %v2801_v39, %v2870_v10  ;;  %v1542_v51 = vsub.f32 %v2805_v5, %v2870_v10 }
  0xb5   :  { %v3862_v61 = vsel %vm2886_vm14, 4294967295, %v3861_v61  ;;  %vm2897_vm15 = vcmp.lt.f32.partialorder %v1442_v42, %v2847_v37  ;;  %v3864_v34 = vmov 0  ;;  %v1534_v16 = vadd.f32 %v2052_v44, %v1504_v19 }
  0xb6   :  { %3863 = vst [vmem:[#allocation50_spill] sm:$0xff] %v3862_v61  ;;  %v3865_v34 = vsel %vm2897_vm15, 4294967295, %v3864_v34  ;;  %v1535_v62 = vadd.f32 %v2053_v38, %v1505_v29  ;;  %v1543_v18 = vsub.f32 %v2811_v32, %v2870_v10  ;;  %v1536_v63 = vadd.f32 %v2054_v31, %v1506_v33 }
  0xb7   :  { %3866 = vst [vmem:[#allocation51_spill] sm:$0xff] %v3865_v34  ;;  %v1544_v35 = vmul.f32 %v1540_v22, %v1540_v22  ;;  %v1545_v28 = vmul.f32 %v1541_v40, %v1541_v40  ;;  %v1546_v2 = vmul.f32 %v1542_v51, %v1542_v51  ;;  %v1537_v26 = vadd.f32 %v2055_v8, %v1507_v23 }
  0xb8   :  { %v1547_v57 = vmul.f32 %v1543_v18, %v1543_v18  ;;  %vm2904_vm0 = vcmp.lt.f32.partialorder %v1443_v0, %v2854_v20  ;;  %v3867_v39 = vmov 0  ;;  %v1448_v38 = vsel %vm2873_vm13, %v1440_v36, %v2835_v27 }
  0xb9   :  { %v3868_v39 = vsel %vm2904_vm0, 4294967295, %v3867_v39  ;;  %v2057_v5 = vrot.slane %v1544_v35, 11  ;;  %v2058_v46 = vrot.slane %v1545_v28, 11  ;;  %v2059_v3 = vrot.slane %v1546_v2, 11 }
  0xba   :  { %3869 = vst [vmem:[#allocation52_spill] sm:$0xff] %v3868_v39  ;;  %v1449_v31 = vsel %vm2886_vm14, %v1441_v43, %v2841_v41  ;;  %v1450_v8 = vsel %vm2897_vm15, %v1442_v42, %v2847_v37  ;;  %v2060_v23 = vrot.slane %v1547_v57, 11  ;;  %v1451_v29 = vsel %vm2904_vm0, %v1443_v0, %v2854_v20 }
  0xbb   :  { %v1564_v44 = vadd.f32 %v2057_v5, %v1534_v16  ;;  %v1565_v32 = vadd.f32 %v2058_v46, %v1535_v62  ;;  %v1566_v19 = vadd.f32 %v2059_v3, %v1536_v63  ;;  %v3870_v45 = vmov 0 }
  0xbc   :  { %v1567_v4 = vadd.f32 %v2060_v23, %v1537_v26  ;;  %v3873_v27 = vmov 0  ;;  %v3876_v41 = vmov 0  ;;  %v3879_v43 = vmov 0 }
  0xbd   :  { %vm2920_vm12 = vcmp.lt.f32.partialorder %v1564_v44, %v1448_v38  ;;  %vm2924_vm13 = vcmp.lt.f32.partialorder %v1565_v32, %v1449_v31  ;;  %vm2928_vm14 = vcmp.lt.f32.partialorder %v1566_v19, %v1450_v8  ;;  %v2970_v23 = vsel %vm2346_vm2, %v2248_v48, %v2200_v6 }
  0xbe   :  { %v3871_v45 = vsel %vm2920_vm12, 4294967295, %v3870_v45  ;;  %v3874_v27 = vsel %vm2924_vm13, 4294967295, %v3873_v27  ;;  %v3877_v41 = vsel %vm2928_vm14, 4294967295, %v3876_v41  ;;  %v1572_v37 = vsel %vm2920_vm12, %v1564_v44, %v1448_v38 }
  0xbf   :  { %3872 = vst [vmem:[#allocation53_spill] sm:$0xff] %v3871_v45  ;;  %3875 = vst [vmem:[#allocation54_spill] sm:$0xff] %v3874_v27  ;;  %v1573_v36 = vsel %vm2924_vm13, %v1565_v32, %v1449_v31  ;;  %v1574_v20 = vsel %vm2928_vm14, %v1566_v19, %v1450_v8  ;;  %vm2938_vm0 = vcmp.lt.f32.partialorder %v1567_v4, %v1451_v29  ;;  %vm3882_vm12 = vcmask 1040384  }
  0xc0   :  { %3878 = vst [vmem:[#allocation55_spill] sm:$0xff] %v3877_v41  ;;  %v3880_v43 = vsel %vm2938_vm0, 4294967295, %v3879_v43  ;;  %v1820_v42 = vrot.slane %v1572_v37, %v2221_v13  ;;  %v1824_v0 = vrot.slane %v1572_v37, %v2224_v14  ;;  %v1828_v1 = vrot.slane %v1573_v36, %v2221_v13  ;;  %vm3883_vm13 = vmmov %vm3882_vm12 }
  0xc1   :  { %3881 = vst [vmem:[#allocation56_spill] sm:$0xff] %v3880_v43  ;;  %v1832_v9 = vrot.slane %v1573_v36, %v2224_v14  ;;  %v1836_v15 = vrot.slane %v1574_v20, %v2221_v13  ;;  %vm3884_vm15 = vmmov %vm3882_vm12  ;;  %v1575_v40 = vsel %vm2938_vm0, %v1567_v4, %v1451_v29  ;;  %v1840_v16 = vrot.slane %v1574_v20, %v2224_v14 }
  0xc2   :  { %v1857_v21 = vsel %vm3882_vm12, %v1820_v42, 0.0  ;;  %v1858_v33 = vsel %vm3883_vm13, %v1824_v0, 0.0  ;;  %v1860_v22 = vsel %vm3884_vm15, %v1828_v1, 0.0  ;;  %vm3885_vm14 = vmmov %vm3882_vm12  ;;  %v1844_v63 = vrot.slane %v1575_v40, %v2221_v13 }
  0xc3   :  { %v1859_v51 = vadd.f32 %v1858_v33, %v1857_v21  ;;  %v1862_v62 = vsel %vm3885_vm14, %v1832_v9, 0.0  ;;  %vm3886_vm11 = vmmov %vm3882_vm12  ;;  %v1848_v2 = vrot.slane %v1575_v40, %v2224_v14  ;;  %v2964_v8 = vsel %vm2341_vm1, %v2248_v48, %v2200_v6 }
  0xc4   :  { %v1864_v35 = vsel %vm3886_vm11, %v1836_v15, 0.0  ;;  %vm3887_vm12 = vmmov %vm3886_vm11  ;;  %v2976_v44 = vsel %vm2351_vm3, %v2248_v48, %v2200_v6  ;;  %v2982_v32 = vsel %vm2356_vm4, %v2248_v48, %v2200_v6  ;;  %v2988_v19 = vsel %vm2341_vm1, %v2251_v49, %v2214_v11 }
  0xc5   :  { %v1861_v18 = vadd.f32 %v1860_v22, %v1859_v51  ;;  %v1866_v26 = vsel %vm3887_vm12, %v1840_v16, 0.0  ;;  %vm3888_vm13 = vmmov %vm3886_vm11  ;;  %v2994_v29 = vsel %vm2346_vm2, %v2251_v49, %v2214_v11  ;;  %v3000_v4 = vsel %vm2351_vm3, %v2251_v49, %v2214_v11 }
  0xc6   :  { %v1868_v5 = vsel %vm3888_vm13, %v1844_v63, 0.0  ;;  %vm3889_vm15 = vmmov %vm3886_vm11  ;;  %v3006_v6 = vsel %vm2356_vm4, %v2251_v49, %v2214_v11  ;;  %v3012_v48 = vsel %vm2341_vm1, %v2254_v50, %v2216_v12  ;;  %v3018_v37 = vsel %vm2346_vm2, %v2254_v50, %v2216_v12 }
  0xc7   :  { %v1863_v28 = vadd.f32 %v1862_v62, %v1861_v18  ;;  %v1870_v3 = vsel %vm3889_vm15, %v1848_v2, 0.0  ;;  %v3024_v36 = vsel %vm2351_vm3, %v2254_v50, %v2216_v12  ;;  %v3030_v11 = vsel %vm2356_vm4, %v2254_v50, %v2216_v12 }
  0xc8   :  { %v3036_v49 = vsel %vm2341_vm1, %v2305_v58, %v2245_v47  ;;  %v3042_v20 = vsel %vm2346_vm2, %v2305_v58, %v2245_v47  ;;  %v3048_v42 = vsel %vm2351_vm3, %v2305_v58, %v2245_v47  ;;  %v3054_v12 = vsel %vm2356_vm4, %v2305_v58, %v2245_v47  ;;  %vm3890_vm1 = vmmov %vm3886_vm11 }
  0xc9   :  { %v1865_v57 = vadd.f32 %v1864_v35, %v1863_v28  ;;  %v275_v50 = vrot.slane %v2964_v8, %v2221_v13  ;;  %v279_v53 = vrot.slane %v2964_v8, %v2224_v14  ;;  %v283_v54 = vrot.slane %v2970_v23, %v2221_v13  ;;  %vm3891_vm2 = vmmov %vm3890_vm1 }
  0xca   :  { %v287_v55 = vrot.slane %v2970_v23, %v2224_v14  ;;  %v291_v0 = vrot.slane %v2976_v44, %v2221_v13  ;;  %v295_v56 = vrot.slane %v2976_v44, %v2224_v14  ;;  %v299_v47 = vrot.slane %v2982_v32, %v2221_v13  ;;  %vm3892_vm3 = vmmov %vm3890_vm1 }
  0xcb   :  { %v1867_v46 = vadd.f32 %v1866_v26, %v1865_v57  ;;  %v303_v58 = vrot.slane %v2982_v32, %v2224_v14  ;;  %v319_v1 = vrot.slane %v2988_v19, %v2221_v13  ;;  %v323_v9 = vrot.slane %v2988_v19, %v2224_v14  ;;  %vm3893_vm4 = vmmov %vm3890_vm1 }
  0xcc   :  { %v327_v15 = vrot.slane %v2994_v29, %v2221_v13  ;;  %v331_v21 = vrot.slane %v2994_v29, %v2224_v14  ;;  %v335_v33 = vrot.slane %v3000_v4, %v2221_v13  ;;  %v339_v22 = vrot.slane %v3000_v4, %v2224_v14  ;;  %vm3894_vm11 = vmmov %vm3890_vm1 }
  0xcd   :  { %v1869_v38 = vadd.f32 %v1868_v5, %v1867_v46  ;;  %v343_v40 = vrot.slane %v3006_v6, %v2221_v13  ;;  %v347_v51 = vrot.slane %v3006_v6, %v2224_v14  ;;  %v363_v16 = vrot.slane %v3012_v48, %v2221_v13  ;;  %vm3895_vm14 = vmmov %vm3890_vm1 }
  0xce   :  { %v367_v62 = vrot.slane %v3012_v48, %v2224_v14  ;;  %v371_v18 = vrot.slane %v3018_v37, %v2221_v13  ;;  %v375_v63 = vrot.slane %v3018_v37, %v2224_v14  ;;  %v379_v35 = vrot.slane %v3024_v36, %v2221_v13  ;;  %vm3896_vm12 = vmmov %vm3890_vm1 }
  0xcf   :  { %v1871_v31 = vadd.f32 %v1870_v3, %v1869_v38  ;;  %v383_v28 = vrot.slane %v3024_v36, %v2224_v14  ;;  %v387_v2 = vrot.slane %v3030_v11, %v2221_v13  ;;  %v391_v26 = vrot.slane %v3030_v11, %v2224_v14  ;;  %vm3897_vm13 = vmmov %vm3890_vm1 }
  0xd0   :  { %v407_v57 = vrot.slane %v3036_v49, %v2221_v13  ;;  %v411_v5 = vrot.slane %v3036_v49, %v2224_v14  ;;  %v415_v46 = vrot.slane %v3042_v20, %v2221_v13  ;;  %v419_v3 = vrot.slane %v3042_v20, %v2224_v14 }
  0xd1   :  { %1872 = vadd.xlane.f32.xlu1 %v1871_v31  ;;  %v423_v38 = vrot.slane %v3048_v42, %v2221_v13  ;;  %v427_v31 = vrot.slane %v3048_v42, %v2224_v14  ;;  %v431_v10 = vrot.slane %v3054_v12, %v2221_v13  ;;  %v435_v30 = vrot.slane %v3054_v12, %v2224_v14 }
  0xd2   :  { %v445_v43 = vsel %vm3890_vm1, %v275_v50, %v319_v1  ;;  %v446_v41 = vsel %vm3891_vm2, %v279_v53, %v323_v9  ;;  %v447_v27 = vsel %vm3892_vm3, %v283_v54, %v327_v15  ;;  %v448_v45 = vsel %vm3893_vm4, %v287_v55, %v331_v21  ;;  %vm3914_vm2 = vmmov %vm3890_vm1 }
  0xd3   :  { %v449_v39 = vsel %vm3894_vm11, %v291_v0, %v335_v33  ;;  %v450_v34 = vsel %vm3895_vm14, %v295_v56, %v339_v22  ;;  %v451_v61 = vsel %vm3896_vm12, %v299_v47, %v343_v40  ;;  %v452_v7 = vsel %vm3897_vm13, %v303_v58, %v347_v51  ;;  %vm3915_vm3 = vmmov %vm3890_vm1 }
  0xd4   :  { %vm453_vm15 = vcmask 1041408   ;;  %vm462_vm0 = vcmask 1042432   ;;  %v667_v50 = vsel %vm2445_vm5, %v2308_v59, %v2964_v8  ;;  %v668_v53 = vsel %vm2450_vm6, %v2308_v59, %v2970_v23  ;;  %vm3916_vm4 = vmmov %vm3890_vm1 }
  0xd5   :  { %v454_v54 = vsel %vm453_vm15, %v445_v43, %v363_v16  ;;  %v455_v55 = vsel %vm453_vm15, %v446_v41, %v367_v62  ;;  %v456_v0 = vsel %vm453_vm15, %v447_v27, %v371_v18  ;;  %v457_v56 = vsel %vm453_vm15, %v448_v45, %v375_v63  ;;  %v3900_v18 = vld [vmem:[#allocation17_spill] sm:$0xff] }
  0xd6   :  { %v458_v47 = vsel %vm453_vm15, %v449_v39, %v379_v35  ;;  %v459_v58 = vsel %vm453_vm15, %v450_v34, %v383_v28  ;;  %v460_v1 = vsel %vm453_vm15, %v451_v61, %v387_v2  ;;  %v461_v8 = vsel %vm453_vm15, %v452_v7, %v391_v26 }
  0xd7   :  { %v463_v15 = vsel %vm462_vm0, %v454_v54, %v407_v57  ;;  %v464_v23 = vsel %vm462_vm0, %v455_v55, %v411_v5  ;;  %v465_v43 = vsel %vm462_vm0, %v456_v0, %v415_v46  ;;  %v466_v41 = vsel %vm462_vm0, %v457_v56, %v419_v3  ;;  %v3908_v5 = vld [vmem:[#allocation19_spill] sm:$0xff] }
  0xd8   :  { %v467_v27 = vsel %vm462_vm0, %v458_v47, %v423_v38  ;;  %v468_v45 = vsel %vm462_vm0, %v459_v58, %v427_v31  ;;  %v469_v39 = vsel %vm462_vm0, %v460_v1, %v431_v10  ;;  %v470_v34 = vsel %vm462_vm0, %v461_v8, %v435_v30 }
  0xd9   :  { %v479_v61 = vcombine.low %v463_v15, %v464_v23  ;;  %v480_v21 = vcombine.low %v465_v43, %v466_v41  ;;  %v481_v7 = vcombine.low %v467_v27, %v468_v45  ;;  %v482_v33 = vcombine.low %v469_v39, %v470_v34 }
  0xda   :  { %v669_v40 = vsel %vm2458_vm7, %v2308_v59, %v2976_v44  ;;  %v670_v51 = vsel %vm2477_vm8, %v2308_v59, %v2982_v32  ;;  %v671_v30 = vsel %vm2445_vm5, %v2311_v60, %v2988_v19  ;;  %v672_v10 = vsel %vm2450_vm6, %v2311_v60, %v2994_v29  ;;  %v3898_v32 = vld [vmem:[#allocation15_spill] sm:$0xff] }
  0xdb   :  { %487 = vst [vmem:[#allocation7] sm:$0xff] %v479_v61  ;;  %488 = vst [vmem:[#allocation7 + $0x8] sm:$0xff] %v480_v21  ;;  %v673_v44 = vsel %vm2458_vm7, %v2311_v60, %v3000_v4  ;;  %v674_v59 = vsel %vm2477_vm8, %v2311_v60, %v3006_v6  ;;  %v675_v19 = vsel %vm2445_vm5, %v3898_v32, %v3012_v48  ;;  %v3899_v6 = vld [vmem:[#allocation16_spill] sm:$0xff] }
  0xdc   :  { %489 = vst [vmem:[#allocation7 + $0x10] sm:$0xff] %v481_v7  ;;  %490 = vst [vmem:[#allocation7 + $0x18] sm:$0xff] %v482_v33  ;;  %v676_v29 = vsel %vm2450_vm6, %v3898_v32, %v3018_v37  ;;  %v677_v4 = vsel %vm2458_vm7, %v3898_v32, %v3024_v36  ;;  %v678_v60 = vsel %vm2477_vm8, %v3898_v32, %v3030_v11 }
  0xdd   :  { %v679_v48 = vsel %vm2445_vm5, %v3899_v6, %v3036_v49  ;;  %v680_v37 = vsel %vm2450_vm6, %v3899_v6, %v3042_v20  ;;  %v681_v36 = vsel %vm2458_vm7, %v3899_v6, %v3048_v42  ;;  %v682_v11 = vsel %vm2477_vm8, %v3899_v6, %v3054_v12  ;;  %v3903_v20 = vld [vmem:[#allocation25_spill] sm:$0xff]  ;;  %v3905_v42 = vld [vmem:[#allocation26_spill] sm:$0xff]  ;;  %vm3910_vm7 = vmmov %vm3890_vm1 }
  0xde   :  { %v3211_v52 = vsel %vm2536_vm9, %v3900_v18, %v667_v50  ;;  %v3216_v24 = vsel %vm2541_vm10, %v3900_v18, %v668_v53  ;;  %vm3904_vm5 = vnez %v3903_v20  ;;  %vm3906_vm6 = vnez %v3905_v42  ;;  %v3907_v12 = vld [vmem:[#allocation18_spill] sm:$0xff]  ;;  %v3909_v50 = vld [vmem:[#allocation20_spill] sm:$0xff]  ;;  %vm3911_vm8 = vmmov %vm3890_vm1 }
  0xdf   :  { %v3221_v25 = vsel %vm3904_vm5, %v3900_v18, %v669_v40  ;;  %v3226_v17 = vsel %vm3906_vm6, %v3900_v18, %v670_v51  ;;  %v3231_v35 = vsel %vm2536_vm9, %v3907_v12, %v671_v30  ;;  %v3236_v28 = vsel %vm2541_vm10, %v3907_v12, %v672_v10 }
  0xe0   :  { %v3241_v2 = vsel %vm3904_vm5, %v3907_v12, %v673_v44  ;;  %v3246_v57 = vsel %vm3906_vm6, %v3907_v12, %v674_v59  ;;  %v3251_v46 = vsel %vm2536_vm9, %v3908_v5, %v675_v19  ;;  %v3256_v3 = vsel %vm2541_vm10, %v3908_v5, %v676_v29 }
  0xe1   :  { %v3261_v38 = vsel %vm3904_vm5, %v3908_v5, %v677_v4  ;;  %v3266_v31 = vsel %vm3906_vm6, %v3908_v5, %v678_v60  ;;  %v3271_v53 = vsel %vm2536_vm9, %v3909_v50, %v679_v48  ;;  %v3276_v54 = vsel %vm2541_vm10, %v3909_v50, %v680_v37  ;;  %vm3912_vm9 = vmmov %vm3890_vm1 }
  0xe2   :  { %v3281_v0 = vsel %vm3904_vm5, %v3909_v50, %v681_v36  ;;  %v3286_v56 = vsel %vm3906_vm6, %v3909_v50, %v682_v11  ;;  %v814_v47 = vrot.slane %v3211_v52, %v2221_v13  ;;  %v818_v58 = vrot.slane %v3211_v52, %v2224_v14  ;;  %vm3913_vm10 = vmmov %vm3890_vm1 }
  0xe3   :  { %v551_v9 = vpop.xlane.xlu0 %550  ;;  %v822_v1 = vrot.slane %v3216_v24, %v2221_v13  ;;  %v826_v8 = vrot.slane %v3216_v24, %v2224_v14  ;;  %v834_v23 = vrot.slane %v3221_v25, %v2224_v14  ;;  %v838_v43 = vrot.slane %v3226_v17, %v2221_v13 }
  0xe4   :  { %v552_v22 = vrot.slane %v551_v9, 4  ;;  %v842_v41 = vrot.slane %v3226_v17, %v2224_v14  ;;  %v858_v27 = vrot.slane %v3231_v35, %v2221_v13  ;;  %v862_v45 = vrot.slane %v3231_v35, %v2224_v14 }
  0xe5   :  { %v866_v39 = vrot.slane %v3236_v28, %v2221_v13  ;;  %v870_v34 = vrot.slane %v3236_v28, %v2224_v14  ;;  %v874_v61 = vrot.slane %v3241_v2, %v2221_v13  ;;  %v878_v21 = vrot.slane %v3241_v2, %v2224_v14 }
  0xe6   :  { %v553_v16 = vadd.f32 %v552_v22, %v551_v9  ;;  %v830_v9 = vrot.slane %v3221_v25, %v2221_v13  ;;  %v882_v7 = vrot.slane %v3246_v57, %v2221_v13  ;;  %v886_v33 = vrot.slane %v3246_v57, %v2224_v14 }
  0xe7   :  { %v902_v22 = vrot.slane %v3251_v46, %v2221_v13  ;;  %v906_v40 = vrot.slane %v3251_v46, %v2224_v14  ;;  %v910_v51 = vrot.slane %v3256_v3, %v2221_v13  ;;  %v914_v30 = vrot.slane %v3256_v3, %v2224_v14 }
  0xe8   :  { %v554_v62 = vrot.slane %v553_v16, 2  ;;  %v918_v10 = vrot.slane %v3261_v38, %v2221_v13  ;;  %v922_v44 = vrot.slane %v3261_v38, %v2224_v14  ;;  %v926_v59 = vrot.slane %v3266_v31, %v2221_v13 }
  0xe9   :  { %v930_v32 = vrot.slane %v3266_v31, %v2224_v14  ;;  %v946_v19 = vrot.slane %v3271_v53, %v2221_v13  ;;  %v954_v29 = vrot.slane %v3276_v54, %v2221_v13  ;;  %v958_v4 = vrot.slane %v3276_v54, %v2224_v14 }
  0xea   :  { %v555_v26 = vadd.f32 %v554_v62, %v553_v16  ;;  %v950_v16 = vrot.slane %v3271_v53, %v2224_v14  ;;  %v962_v60 = vrot.slane %v3281_v0, %v2221_v13  ;;  %v966_v6 = vrot.slane %v3281_v0, %v2224_v14 }
  0xeb   :  { %v970_v48 = vrot.slane %v3286_v56, %v2221_v13  ;;  %v974_v37 = vrot.slane %v3286_v56, %v2224_v14  ;;  %v983_v36 = vsel %vm3910_vm7, %v814_v47, %v858_v27  ;;  %v984_v11 = vsel %vm3911_vm8, %v818_v58, %v862_v45 }
  0xec   :  { %v556_v55 = vrot.slane %v555_v26, 1  ;;  %v985_v62 = vsel %vm3912_vm9, %v822_v1, %v866_v39  ;;  %v986_v18 = vsel %vm3913_vm10, %v826_v8, %v870_v34  ;;  %v987_v63 = vsel %vm3890_vm1, %v830_v9, %v874_v61 }
  0xed   :  { %v988_v49 = vsel %vm3914_vm2, %v834_v23, %v878_v21  ;;  %v989_v20 = vsel %vm3915_vm3, %v838_v43, %v882_v7  ;;  %v990_v42 = vsel %vm3916_vm4, %v842_v41, %v886_v33  ;;  %v991_v12 = vsel %vm453_vm15, %v983_v36, %v902_v22  ;;  %v3917_v7 = vld [vmem:[#allocation21_spill] sm:$0xff]  ;;  %v3938_v36 = vld [vmem:[#allocation30_spill] sm:$0xff] }
  0xee   :  { %v557_v15 = vadd.f32 %v556_v55, %v555_v26  ;;  %v992_v26 = vsel %vm453_vm15, %v984_v11, %v906_v40  ;;  %v993_v5 = vsel %vm453_vm15, %v985_v62, %v910_v51  ;;  %v994_v50 = vsel %vm453_vm15, %v986_v18, %v914_v30  ;;  %v3918_v33 = vld [vmem:[#allocation33_spill] sm:$0xff]  ;;  %v3920_v40 = vld [vmem:[#allocation34_spill] sm:$0xff]  ;;  %v3922_v30 = vld [vmem:[#allocation35_spill] sm:$0xff] }
  0xef   :  { %v995_v55 = vsel %vm453_vm15, %v987_v63, %v918_v10  ;;  %v996_v47 = vsel %vm453_vm15, %v988_v49, %v922_v44  ;;  %v997_v58 = vsel %vm453_vm15, %v989_v20, %v926_v59  ;;  %v998_v1 = vsel %vm453_vm15, %v990_v42, %v930_v32  ;;  %v3924_v44 = vld [vmem:[#allocation36_spill] sm:$0xff]  ;;  %v3939_v63 = vld [vmem:[#allocation31_spill] sm:$0xff] }
  0xf0   :  { %2061 = vpush %v557_v15  ;;  %v999_v8 = vsel %vm462_vm0, %v991_v12, %v946_v19  ;;  %v1000_v9 = vsel %vm462_vm0, %v992_v26, %v950_v16  ;;  %v1001_v15 = vsel %vm462_vm0, %v993_v5, %v954_v29  ;;  %v1002_v23 = vsel %vm462_vm0, %v994_v50, %v958_v4  ;;  %v3927_v19 = vld [vmem:[#allocation27_spill] sm:$0xff]  ;;  %v3928_v16 = vld [vmem:[#allocation28_spill] sm:$0xff]  ;;  %v3929_v29 = vld [vmem:[#allocation29_spill] sm:$0xff] }
  0xf1   :  { %v1003_v43 = vsel %vm462_vm0, %v995_v55, %v962_v60  ;;  %v1004_v41 = vsel %vm462_vm0, %v996_v47, %v966_v6  ;;  %v1005_v27 = vsel %vm462_vm0, %v997_v58, %v970_v48  ;;  %v1006_v45 = vsel %vm462_vm0, %v998_v1, %v974_v37  ;;  %v3930_v4 = vld [vmem:[#allocation41_spill] sm:$0xff]  ;;  %v3940_v26 = vld [vmem:[#allocation32_spill] sm:$0xff] }
  0xf2   :  { %v1015_v39 = vcombine.low %v999_v8, %v1000_v9  ;;  %v1016_v34 = vcombine.low %v1001_v15, %v1002_v23  ;;  %v1017_v61 = vcombine.low %v1003_v43, %v1004_v41  ;;  %v1018_v21 = vcombine.low %v1005_v27, %v1006_v45  ;;  %v3936_v37 = vld [vmem:[#allocation45_spill] sm:$0xff]  ;;  %v3944_v9 = vld [vmem:[#allocation50_spill] sm:$0xff]  ;;  %v3946_v23 = vld [vmem:[#allocation51_spill] sm:$0xff] }
  0xf3   :  { %vm3919_vm11 = vnez %v3918_v33  ;;  %vm3921_vm14 = vnez %v3920_v40  ;;  %vm3923_vm12 = vnez %v3922_v30  ;;  %vm3925_vm13 = vnez %v3924_v44  ;;  %v3941_v58 = vld [vmem:[#allocation37_spill] sm:$0xff]  ;;  %v3948_v41 = vld [vmem:[#allocation52_spill] sm:$0xff]  ;;  %v3950_v45 = vld [vmem:[#allocation38_spill] sm:$0xff] }
  0xf4   :  { %v1204_v22 = vsel %vm3919_vm11, %v3917_v7, %v3211_v52  ;;  %v1205_v51 = vsel %vm3921_vm14, %v3917_v7, %v3216_v24  ;;  %v1206_v10 = vsel %vm3923_vm12, %v3917_v7, %v3221_v25  ;;  %v1207_v59 = vsel %vm3925_vm13, %v3917_v7, %v3226_v17  ;;  %1024 = vst [vmem:[#allocation7 + $0x20] sm:$0xff] %v1015_v39  ;;  %v3926_v52 = vld [vmem:[#allocation22_spill] sm:$0xff]  ;;  %v3942_v1 = vld [vmem:[#allocation49_spill] sm:$0xff]  ;;  %v3951_v33 = vld [vmem:[#allocation39_spill] sm:$0xff] }
  0xf5   :  { %1025 = vst [vmem:[#allocation7 + $0x28] sm:$0xff] %v1016_v34  ;;  %1026 = vst [vmem:[#allocation7 + $0x30] sm:$0xff] %v1017_v61  ;;  %v1208_v32 = vsel %vm3919_vm11, %v3926_v52, %v3231_v35  ;;  %v1209_v24 = vsel %vm3921_vm14, %v3926_v52, %v3236_v28  ;;  %v1210_v25 = vsel %vm3923_vm12, %v3926_v52, %v3241_v2  ;;  %vm3931_vm5 = vnez %v3930_v4  ;;  %v3952_v44 = vld [vmem:[#allocation40_spill] sm:$0xff] }
  0xf6   :  { %1027 = vst [vmem:[#allocation7 + $0x38] sm:$0xff] %v1018_v21  ;;  %v1211_v17 = vsel %vm3925_vm13, %v3926_v52, %v3246_v57  ;;  %v1212_v35 = vsel %vm3919_vm11, %v3927_v19, %v3251_v46  ;;  %v1213_v28 = vsel %vm3921_vm14, %v3927_v19, %v3256_v3  ;;  %v1214_v2 = vsel %vm3923_vm12, %v3927_v19, %v3261_v38 }
  0xf7   :  { %v1215_v57 = vsel %vm3925_vm13, %v3927_v19, %v3266_v31  ;;  %v1216_v46 = vsel %vm3919_vm11, %v3928_v16, %v3271_v53  ;;  %v1217_v3 = vsel %vm3921_vm14, %v3928_v16, %v3276_v54  ;;  %v1218_v38 = vsel %vm3923_vm12, %v3928_v16, %v3281_v0  ;;  %v3932_v53 = vld [vmem:[#allocation42_spill] sm:$0xff]  ;;  %v3934_v54 = vld [vmem:[#allocation43_spill] sm:$0xff] }
  0xf8   :  { %v1219_v31 = vsel %vm3925_vm13, %v3928_v16, %v3286_v56  ;;  %v1328_v60 = vsel %vm3931_vm5, %v3929_v29, %v1204_v22  ;;  %vm3933_vm6 = vnez %v3932_v53  ;;  %vm3935_vm7 = vnez %v3934_v54  ;;  %v3963_v53 = vld [vmem:[#allocation47_spill] sm:$0xff] }
  0xf9   :  { %v1329_v6 = vsel %vm3933_vm6, %v3929_v29, %v1205_v51  ;;  %v1330_v48 = vsel %vm3935_vm7, %v3929_v29, %v1206_v10  ;;  %vm3937_vm8 = vnez %v3936_v37  ;;  %v1332_v56 = vsel %vm3931_vm5, %v3938_v36, %v1208_v32 }
  0xfa   :  { %v1331_v0 = vsel %vm3937_vm8, %v3929_v29, %v1207_v59  ;;  %v1333_v11 = vsel %vm3933_vm6, %v3938_v36, %v1209_v24  ;;  %v1334_v62 = vsel %vm3935_vm7, %v3938_v36, %v1210_v25  ;;  %v1335_v18 = vsel %vm3937_vm8, %v3938_v36, %v1211_v17  ;;  %v3953_v25 = vld [vmem:[#allocation44_spill] sm:$0xff]  ;;  %v3954_v17 = vld [vmem:[#allocation53_spill] sm:$0xff] }
  0xfb   :  { %v1336_v49 = vsel %vm3931_vm5, %v3939_v63, %v1212_v35  ;;  %v1337_v20 = vsel %vm3933_vm6, %v3939_v63, %v1213_v28  ;;  %v1338_v42 = vsel %vm3935_vm7, %v3939_v63, %v1214_v2  ;;  %v1339_v12 = vsel %vm3937_vm8, %v3939_v63, %v1215_v57  ;;  %v3956_v35 = vld [vmem:[#allocation54_spill] sm:$0xff]  ;;  %v3958_v2 = vld [vmem:[#allocation55_spill] sm:$0xff]  ;;  %v3964_v36 = vld [vmem:[#allocation48_spill] sm:$0xff] }
  0xfc   :  { %v1340_v5 = vsel %vm3931_vm5, %v3940_v26, %v1216_v46  ;;  %v1341_v50 = vsel %vm3933_vm6, %v3940_v26, %v1217_v3  ;;  %v1342_v55 = vsel %vm3935_vm7, %v3940_v26, %v1218_v38  ;;  %v1343_v47 = vsel %vm3937_vm8, %v3940_v26, %v1219_v31  ;;  %v3960_v46 = vld [vmem:[#allocation56_spill] sm:$0xff]  ;;  %v3962_v38 = vld [vmem:[#allocation46_spill] sm:$0xff] }
  0xfd   :  { %vm3943_vm9 = vnez %v3942_v1  ;;  %vm3945_vm10 = vnez %v3944_v9  ;;  %vm3947_vm1 = vnez %v3946_v23  ;;  %vm3949_vm2 = vnez %v3948_v41 }
  0xfe   :  { %v1452_v8 = vsel %vm3943_vm9, %v3941_v58, %v1328_v60  ;;  %v1453_v15 = vsel %vm3945_vm10, %v3941_v58, %v1329_v6  ;;  %v1454_v43 = vsel %vm3947_vm1, %v3941_v58, %v1330_v48  ;;  %v1455_v27 = vsel %vm3949_vm2, %v3941_v58, %v1331_v0 }
  0xff   :  { %v1456_v39 = vsel %vm3943_vm9, %v3950_v45, %v1332_v56  ;;  %v1457_v34 = vsel %vm3945_vm10, %v3950_v45, %v1333_v11  ;;  %v1458_v61 = vsel %vm3947_vm1, %v3950_v45, %v1334_v62  ;;  %v1459_v21 = vsel %vm3949_vm2, %v3950_v45, %v1335_v18 }
 0x100   :  { %v1460_v22 = vsel %vm3943_vm9, %v3951_v33, %v1336_v49  ;;  %v1461_v40 = vsel %vm3945_vm10, %v3951_v33, %v1337_v20  ;;  %v1462_v51 = vsel %vm3947_vm1, %v3951_v33, %v1338_v42  ;;  %v1463_v30 = vsel %vm3949_vm2, %v3951_v33, %v1339_v12 }
 0x101   :  { %v1464_v59 = vsel %vm3943_vm9, %v3952_v44, %v1340_v5  ;;  %v1465_v52 = vsel %vm3945_vm10, %v3952_v44, %v1341_v50  ;;  %v1466_v32 = vsel %vm3947_vm1, %v3952_v44, %v1342_v55  ;;  %v1467_v24 = vsel %vm3949_vm2, %v3952_v44, %v1343_v47 }
 0x102   :  { %vm3955_vm3 = vnez %v3954_v17  ;;  %vm3957_vm4 = vnez %v3956_v35  ;;  %vm3959_vm11 = vnez %v3958_v2  ;;  %vm3961_vm14 = vnez %v3960_v46 }
 0x103   :  { %v1576_v19 = vsel %vm3955_vm3, %v3953_v25, %v1452_v8  ;;  %v1577_v28 = vsel %vm3957_vm4, %v3953_v25, %v1453_v15  ;;  %v1578_v57 = vsel %vm3959_vm11, %v3953_v25, %v1454_v43  ;;  %v1579_v3 = vsel %vm3961_vm14, %v3953_v25, %v1455_v27 }
 0x104   :  { %v1580_v31 = vsel %vm3955_vm3, %v3962_v38, %v1456_v39  ;;  %v1581_v29 = vsel %vm3957_vm4, %v3962_v38, %v1457_v34  ;;  %v1582_v4 = vsel %vm3959_vm11, %v3962_v38, %v1458_v61  ;;  %v1583_v60 = vsel %vm3961_vm14, %v3962_v38, %v1459_v21 }
 0x105   :  { %v1584_v6 = vsel %vm3955_vm3, %v3963_v53, %v1460_v22  ;;  %v1585_v54 = vsel %vm3957_vm4, %v3963_v53, %v1461_v40  ;;  %v1586_v37 = vsel %vm3959_vm11, %v3963_v53, %v1462_v51  ;;  %v1587_v0 = vsel %vm3961_vm14, %v3963_v53, %v1463_v30 }
 0x106   :  { %v1588_v56 = vsel %vm3955_vm3, %v3964_v36, %v1464_v59  ;;  %v1589_v11 = vsel %vm3957_vm4, %v3964_v36, %v1465_v52  ;;  %v3581_v62 = vsel %vm3959_vm11, %v3964_v36, %v1466_v32  ;;  %v3586_v18 = vsel %vm3961_vm14, %v3964_v36, %v1467_v24 }
 0x107   :  { %v1599_v63 = vrot.slane %v1576_v19, %v2221_v13  ;;  %v1603_v20 = vrot.slane %v1576_v19, %v2224_v14  ;;  %v1607_v42 = vrot.slane %v1577_v28, %v2221_v13  ;;  %v1611_v12 = vrot.slane %v1577_v28, %v2224_v14 }
 0x108   :  { %v1615_v26 = vrot.slane %v1578_v57, %v2221_v13  ;;  %v1619_v5 = vrot.slane %v1578_v57, %v2224_v14  ;;  %v1623_v50 = vrot.slane %v1579_v3, %v2221_v13  ;;  %v1627_v55 = vrot.slane %v1579_v3, %v2224_v14 }
 0x109   :  { %v1643_v58 = vrot.slane %v1580_v31, %v2221_v13  ;;  %v1647_v1 = vrot.slane %v1580_v31, %v2224_v14  ;;  %v1651_v8 = vrot.slane %v1581_v29, %v2221_v13  ;;  %v1655_v9 = vrot.slane %v1581_v29, %v2224_v14 }
 0x10a   :  { %v1659_v15 = vrot.slane %v1582_v4, %v2221_v13  ;;  %v1663_v23 = vrot.slane %v1582_v4, %v2224_v14  ;;  %v1667_v43 = vrot.slane %v1583_v60, %v2221_v13  ;;  %v1671_v27 = vrot.slane %v1583_v60, %v2224_v14 }
 0x10b   :  { %v1687_v45 = vrot.slane %v1584_v6, %v2221_v13  ;;  %v1691_v39 = vrot.slane %v1584_v6, %v2224_v14  ;;  %v1695_v34 = vrot.slane %v1585_v54, %v2221_v13  ;;  %v1699_v61 = vrot.slane %v1585_v54, %v2224_v14 }
 0x10c   :  { %v1088_v7 = vpop.xlane.xlu0 %1087  ;;  %v1703_v21 = vrot.slane %v1586_v37, %v2221_v13  ;;  %v1711_v33 = vrot.slane %v1587_v0, %v2221_v13  ;;  %v1715_v22 = vrot.slane %v1587_v0, %v2224_v14  ;;  %v1731_v40 = vrot.slane %v1588_v56, %v2221_v13 }
 0x10d   :  { %v1089_v10 = vrot.slane %v1088_v7, 4  ;;  %v1735_v51 = vrot.slane %v1588_v56, %v2224_v14  ;;  %v1739_v30 = vrot.slane %v1589_v11, %v2221_v13  ;;  %v1747_v44 = vrot.slane %v3581_v62, %v2221_v13 }
 0x10e   :  { %v1751_v59 = vrot.slane %v3581_v62, %v2224_v14  ;;  %v1755_v52 = vrot.slane %v3586_v18, %v2221_v13  ;;  %v1759_v32 = vrot.slane %v3586_v18, %v2224_v14  ;;  %vm3965_vm12 = vcmask 1040384  }
 0x10f   :  { %v1090_v16 = vadd.f32 %v1089_v10, %v1088_v7  ;;  %v1707_v7 = vrot.slane %v1586_v37, %v2224_v14  ;;  %v1743_v10 = vrot.slane %v1589_v11, %v2224_v14  ;;  %v1768_v24 = vsel %vm3965_vm12, %v1599_v63, %v1643_v58  ;;  %vm3966_vm13 = vmmov %vm3965_vm12 }
 0x110   :  { %v1769_v25 = vsel %vm3966_vm13, %v1603_v20, %v1647_v1  ;;  %vm3967_vm5 = vmmov %vm3965_vm12  ;;  %v1776_v13 = vsel %vm453_vm15, %v1768_v24, %v1687_v45 }
 0x111   :  { %v1091_v48 = vrot.slane %v1090_v16, 2  ;;  %v1770_v17 = vsel %vm3967_vm5, %v1607_v42, %v1651_v8  ;;  %vm3968_vm6 = vmmov %vm3967_vm5  ;;  %v1777_v14 = vsel %vm453_vm15, %v1769_v25, %v1691_v39  ;;  %v1784_v4 = vsel %vm462_vm0, %v1776_v13, %v1731_v40 }
 0x112   :  { %v1771_v19 = vsel %vm3968_vm6, %v1611_v12, %v1655_v9  ;;  %vm3969_vm7 = vmmov %vm3967_vm5  ;;  %v1785_v60 = vsel %vm462_vm0, %v1777_v14, %v1735_v51 }
 0x113   :  { %v1092_v49 = vadd.f32 %v1091_v48, %v1090_v16  ;;  %v1772_v35 = vsel %vm3969_vm7, %v1615_v26, %v1659_v15  ;;  %vm3970_vm8 = vmmov %vm3967_vm5  ;;  %v1778_v16 = vsel %vm453_vm15, %v1770_v17, %v1695_v34  ;;  %v1779_v46 = vsel %vm453_vm15, %v1771_v19, %v1699_v61 }
 0x114   :  { %v1773_v28 = vsel %vm3970_vm8, %v1619_v5, %v1663_v23  ;;  %vm3971_vm9 = vmmov %vm3967_vm5  ;;  %v1780_v3 = vsel %vm453_vm15, %v1772_v35, %v1703_v21  ;;  %v1786_v53 = vsel %vm462_vm0, %v1778_v16, %v1739_v30  ;;  %v1787_v6 = vsel %vm462_vm0, %v1779_v46, %v1743_v10 }
 0x115   :  { %v1093_v47 = vrot.slane %v1092_v49, 1  ;;  %v1774_v2 = vsel %vm3971_vm9, %v1623_v50, %v1667_v43  ;;  %vm3972_vm10 = vmmov %vm3967_vm5  ;;  %v1781_v38 = vsel %vm453_vm15, %v1773_v28, %v1707_v7  ;;  %v1788_v54 = vsel %vm462_vm0, %v1780_v3, %v1747_v44 }
 0x116   :  { %v1775_v57 = vsel %vm3972_vm10, %v1627_v55, %v1671_v27  ;;  %v1782_v31 = vsel %vm453_vm15, %v1774_v2, %v1711_v33  ;;  %v1789_v48 = vsel %vm462_vm0, %v1781_v38, %v1751_v59  ;;  %v1800_v36 = vcombine.low %v1784_v4, %v1785_v60 }
 0x117   :  { %v1094_v41 = vadd.f32 %v1093_v47, %v1092_v49  ;;  %v1783_v29 = vsel %vm453_vm15, %v1775_v57, %v1715_v22  ;;  %v1790_v37 = vsel %vm462_vm0, %v1782_v31, %v1755_v52  ;;  %v1801_v56 = vcombine.low %v1786_v53, %v1787_v6 }
 0x118   :  { %v1791_v0 = vsel %vm462_vm0, %v1783_v29, %v1759_v32  ;;  %v1802_v11 = vcombine.low %v1788_v54, %v1789_v48  ;;  %1809 = vst [vmem:[#allocation7 + $0x40] sm:$0xff] %v1800_v36 }
 0x119   :  { %2063 = vpush %v1094_v41  ;;  %v1803_v62 = vcombine.low %v1790_v37, %v1791_v0  ;;  %1810 = vst [vmem:[#allocation7 + $0x48] sm:$0xff] %v1801_v56 }
 0x11a   :  { %1811 = vst [vmem:[#allocation7 + $0x50] sm:$0xff] %v1802_v11 }
 0x11b   :  { %1812 = vst [vmem:[#allocation7 + $0x58] sm:$0xff] %v1803_v62 }
 0x11c   :  { %2120 = shalt.err (!%p2117_p0)
}
 0x11d   :  { %s2160_s26 = smov 512   ;;  %s2161_s27 = smov 32   ;;  %v3973_v5 = vlaneseq  ;;  %v3974_v55 = vld [vmem:[#allocation14_spill] sm:$0xff] }
 0x11e   :  { %1913 = dma.vmem_to_hbm [thread:$0]  %s1908_s24, 1536, %s3658_s2, [#allocation4], %s2160_s26, %s2160_s26, %s2161_s27   ;;  %vm1885_vm15 = vcmp.eq.s32.totalorder %v3974_v55, 0 }
 0x11f   :  { %v1884_v50 = vand.u32 127, %v3973_v5  ;;  %s2162_s5 = smov [#allocation8]  }
 0x120   :  { %s1920_s6 = sshll.u32 %s2162_s5, 4  ;;  %s1921_s6 = int_to_ptr.vmem [resolvable:$true] %s1920_s6 }
 0x121   :  { %s2062_s30 = spop %2061  ;;  %vm1891_vm0 = vcmp.eq.s32.totalorder %v1884_v50, 1  ;;  %vm1886_vm1 = vcmp.eq.s32.totalorder %v1884_v50, 0  ;;  %vm1896_vm3 = vcmp.eq.s32.totalorder %v1884_v50, 2  ;;  %s2129_s7 = scalar_lea.vmem %s1921_s6, 128 }
 0x122   :  { %vm1892_vm2 = vmand %vm1885_vm15, %vm1891_vm0  ;;  %v1888_v58 = vstv %s2062_s30  ;;  %p2130_p1 = scmp.ne.s32.totalorder %s1921_s6, %s2129_s7  ;;  %p2134_p2 = scmp.lt.s32.totalorder %s1921_s6, %s1921_s6 }
 0x123   :  { %vm1887_vm4 = vmand %vm1885_vm15, %vm1886_vm1  ;;  %p2135_p3 = scmp.lt.s32.totalorder %s2129_s7, %s2129_s7 }
 0x124   :  { %vm1897_vm11 = vmand %vm1885_vm15, %vm1896_vm3  ;;  %v1889_v8 = vsel %vm1887_vm4, %v1888_v58, 0.0 }
 0x125   :  { %p2136_p4 = por %p2135_p3, %p2134_p2 }
 0x127   :  { %p2137_p5 = pnand %p2136_p4, %p2130_p1 }
 0x14a   :  { %s2064_s4 = spop %2063 }
 0x14b   :  { %v1893_v47 = vstv %s2064_s4 }
 0x14c   :  { %v1894_v1 = vsel %vm1892_vm2, %v1893_v47, 0.0 }
 0x14d   :  { %v1895_v9 = vadd.f32 %v1894_v1, %v1889_v8 }
 0x15a   :  { %v1873_v18 = vpop.xlane.xlu1 %1872 }
 0x15b   :  { %v1874_v63 = vrot.slane %v1873_v18, 4 }
 0x15d   :  { %v1875_v49 = vadd.f32 %v1874_v63, %v1873_v18 }
 0x15f   :  { %v1876_v20 = vrot.slane %v1875_v49, 2 }
 0x161   :  { %v1877_v42 = vadd.f32 %v1876_v20, %v1875_v49 }
 0x163   :  { %v1878_v12 = vrot.slane %v1877_v42, 1 }
 0x165   :  { %v1879_v26 = vadd.f32 %v1878_v12, %v1877_v42 }
 0x167   :  { %2065 = vpush %v1879_v26 }
 0x198   :  { %s2066_s2 = spop %2065 }
 0x199   :  { %v1898_v15 = vstv %s2066_s2 }
 0x19a   :  { %v1899_v23 = vsel %vm1897_vm11, %v1898_v15, 0.0 }
 0x19b   :  { %v1900_v43 = vadd.f32 %v1899_v23, %v1895_v9 }
 0x19d   :  { %1901 = vst [vmem:[#allocation8] sm:$0xff] %v1900_v43 }
 0x19e   :  { %2140 = shalt.err (!%p2137_p5)
}
 0x19f   :  { %1923 = dma.vmem_to_hbm [thread:$0]  %s1921_s6, 128, %s3659_s3, [#allocation9]  }
 0x1a0   :  { %2153 = dma.done.wait [#allocation4], 1536  }
 0x1a1   :  { %2154 = vsyncadd [#allocation4], 4294965760 }
 0x1a2   :  { %2155 = dma.done.wait [#allocation9], 128  }
 0x1a3   :  { %2156 = vsyncadd [#allocation9], 4294967168 }
 0x1a4   :  { %1930 = vsyncpa [#allocation3], 1 }
 0x1a5   :  { %1931 = vsyncpa [#allocation4], 1 }
 0x1a6   :  { %1932 = vsyncpa [#allocation9], 1 }
 0x1a7   :  { %1933 = vsyncpa [#allocation5], 1 }

</bundles_post_ra>
